<compile_context>
chip_gen: v5e
topology: v5e:2x2
jax: 0.10.0
libtpu: 0.0.40
codegen_flags: <defaults>
</compile_context>

<pallas_src>
import functools

import numpy as np
import jax
import jax.numpy as jnp
from jax.experimental import pallas as pl
from jax.experimental.pallas import tpu as pltpu


def _round_up(x, m):
    return (x + m - 1) // m * m


def _fused_encoder_kernel(p_ref, w0_ref, wh_ref, b_ref, o_ref, act_a, act_b, *,
                          frame_w):
    """Fused 4-layer conv encoder for one block of `bb` batch elements.

    p_ref : (1, M, K0p) uint8   layer-0 im2col patches, M = bb*h0*Wf,
                                 K0p = round_up(9*Ci, 128), zero padded
    w0_ref: (K0p, 32)   f32     layer-0 GEMM weight (normalization folded in)
    wh_ref: (3*288, 32) f32     layers 1..3 weights, rows in (kh, kw, ci) order
    b_ref : (4, 32)     f32     per-layer biases (row 0 already adjusted)
    o_ref : (1, 32, Lp) f32     channel-major output, Lp = round_up(M, 128)
    act_a, act_b: VMEM (M + halo, 32) f32   ping-pong activation frames
    """
    wf = frame_w
    m_total = p_ref.shape[1]
    m_alloc = act_a.shape[0]
    out_lanes = o_ref.shape[2]

    # Zero the halo rows of both ping-pong frames: keeps bottom-edge garbage
    # reads finite and provides zeros for the lane padding of the final store.
    halo = jnp.zeros((m_alloc - m_total, 32), jnp.float32)
    act_a[m_total:m_alloc, :] = halo
    act_b[m_total:m_alloc, :] = halo

    # ---- layer 0: uint8 -> f32 cast, single GEMM + bias + ReLU ---------------
    p = p_ref[0].astype(jnp.float32)                                  # (M, K0p)
    a0 = jnp.dot(p, w0_ref[...], preferred_element_type=jnp.float32)  # MXU
    act_a[0:m_total, :] = jnp.maximum(a0 + b_ref[0:1, :], 0.0)

    # ---- layers 1..3: (M, 288) im2col from 9 shifted taps, ONE GEMM each -----
    src, dst = act_a, act_b
    for l in range(1, 4):
        taps = []
        for kh in range(3):
            for kw in range(3):
                off = kh * wf + kw            # kh*wf sublane-aligned (wf % 8 == 0)
                taps.append(src[off:off + m_total, :])        # (M, 32)
        col = jnp.concatenate(taps, axis=1)                   # (M, 288)
        w_l = wh_ref[(l - 1) * 288:l * 288, :]                # (288, 32)
        a = jnp.dot(col, w_l, preferred_element_type=jnp.float32)
        dst[0:m_total, :] = jnp.maximum(a + b_ref[l:l + 1, :], 0.0)
        src, dst = dst, src

    # ---- channel-major, lane-dense (128-multiple) output store ---------------
    o_ref[0] = src[0:out_lanes, :].T                          # (32, Lp)


def _im2col_u8(x_nhwc, kh, kw, stride):
    # TODO(synk): layer-0 stride-2 patch extraction stays in plain JAX on uint8
    # data; everything downstream (all 4 conv GEMMs, bias, ReLU, normalization,
    # channel-major flatten) runs inside the single fused Pallas kernel.
    n, h, w, c = x_nhwc.shape
    oh = (h - kh) // stride + 1
    ow = (w - kw) // stride + 1
    cols = []
    for i in range(kh):
        for j in range(kw):
            cols.append(
                jax.lax.slice(
                    x_nhwc,
                    (0, i, j, 0),
                    (n, i + stride * (oh - 1) + 1, j + stride * (ow - 1) + 1, c),
                    (1, stride, stride, 1)))
    patches = jnp.stack(cols, axis=3)                 # (N, OH, OW, KH*KW, C)
    return patches.reshape(n, oh, ow, kh * kw * c), oh, ow


def _pick_block_batch(n):
    # Biggest block in {4,2,1} that divides N while keeping grid length >= 2
    # (so both TensorCores get work on v7x); VMEM stays a few MiB per step.
    for b in (4, 2):
        if n % b == 0 and n // b >= 2:
            return b
    return 1


def init_encoder_params(obs_shape, key):
    # Deterministic synthetic init (stand-in for utils.weight_init); shapes match
    # nn.Conv2d(obs_shape[0], 32, 3, s=2) + 3x nn.Conv2d(32, 32, 3, s=1).
    ci = obs_shape[0]
    chans = [ci, 32, 32, 32, 32]
    strides = [2, 1, 1, 1]
    params = []
    for li in range(4):
        key, wk = jax.random.split(key)
        fan_in = chans[li] * 3 * 3
        w = jax.random.normal(wk, (3, 3, chans[li], chans[li + 1]), jnp.float32)
        w = w * (1.0 / np.sqrt(fan_in))               # HWIO weights
        b = jnp.zeros((chans[li + 1],), jnp.float32)
        params.append((w, b, strides[li]))
    return params


def encoder_forward(obs_nchw_u8, params, block_batch=None):
    n, ci, _, _ = obs_nchw_u8.shape
    x = jnp.transpose(obs_nchw_u8, (0, 2, 3, 1))       # NHWC, stays uint8
    (w0, b0, s0), (w1, b1, _), (w2, b2, _), (w3, b3, _) = params

    patches, oh0, ow0 = _im2col_u8(x, 3, 3, s0)        # (N, OH0, OW0, K0) uint8
    assert oh0 >= 7 and ow0 >= 7, "input too small for 4 conv layers"

    k0 = 9 * ci
    k0p = _round_up(k0, 128)            # MXU contraction depth / aligned u8 rows
    wf = _round_up(ow0, 8)              # sublane-aligned fixed frame width
    h0, h3 = oh0, oh0 - 6               # frame height / valid output height
    v3 = ow0 - 6                        # valid output width
    p0 = h0 * wf                        # per-element frame rows

    bb = block_batch if block_batch is not None else _pick_block_batch(n)
    assert n % bb == 0
    nblk = n // bb
    m_total = bb * p0                   # GEMM M per grid step
    out_lanes = _round_up(m_total, 128)
    halo = _round_up(max(2 * wf + 2, out_lanes - m_total), 8)
    m_alloc = m_total + halo

    # Zero-pad width -> Wf and K0 -> K0p, stack bb elements per grid block.
    pat = jnp.pad(patches, ((0, 0), (0, 0), (0, wf - ow0), (0, k0p - k0)))
    pat = pat.reshape(nblk, m_total, k0p)              # uint8

    # Fold the /255 - 0.5 input normalization into the layer-0 weight/bias.
    w0f = jnp.pad((w0 * (1.0 / 255.0)).reshape(k0, 32), ((0, k0p - k0), (0, 0)))
    b0a = b0 - 0.5 * jnp.sum(w0, axis=(0, 1, 2))
    whf = jnp.stack([w1, w2, w3]).reshape(3 * 288, 32)  # (layer, kh, kw, ci) rows
    ball = jnp.stack([b0a, b1, b2, b3])                 # (4, 32)

    kernel = functools.partial(_fused_encoder_kernel, frame_w=wf)
    out = pl.pallas_call(
        kernel,
        out_shape=jax.ShapeDtypeStruct((nblk, 32, out_lanes), jnp.float32),
        grid=(nblk,),
        in_specs=[
            pl.BlockSpec((1, m_total, k0p), lambda i: (i, 0, 0)),  # uint8 patches
            pl.BlockSpec((k0p, 32), lambda i: (0, 0)),             # layer-0 weight
            pl.BlockSpec((3 * 288, 32), lambda i: (0, 0)),         # layers 1-3 W
            pl.BlockSpec((4, 32), lambda i: (0, 0)),               # biases
        ],
        out_specs=pl.BlockSpec((1, 32, out_lanes), lambda i: (i, 0, 0)),
        scratch_shapes=[
            pltpu.VMEM((m_alloc, 32), jnp.float32),   # ping activation frame
            pltpu.VMEM((m_alloc, 32), jnp.float32),   # pong activation frame
        ],
        compiler_params=pltpu.CompilerParams(
            dimension_semantics=("parallel",),
            # Working set (double-buffered ins/outs, 2 frames, im2col temps) is
            # a few MiB/elem; 48 MiB fits v7x's 64 MiB VMEM with headroom.
            vmem_limit_bytes=48 * 1024 * 1024),
    )(pat, w0f, whf, ball)

    # Crop lane padding, un-stack the per-block batch, crop garbage rows/cols,
    # flatten in (C, H, W) order == PyTorch h.view(N, -1) on an NCHW tensor.
    out = out[:, :, :m_total].reshape(nblk, 32, bb, h0, wf)
    out = out.transpose(0, 2, 1, 3, 4).reshape(n, 32, h0, wf)
    return out[:, :, :h3, :v3].reshape(n, 32 * h3 * v3)


def encoder_reference(obs_nchw_u8, params):
    x = jnp.transpose(obs_nchw_u8, (0, 2, 3, 1)).astype(jnp.float32) / 255.0 - 0.5
    for (w, b, stride) in params:
        x = jax.lax.conv_general_dilated(
            x, w, (stride, stride), "VALID",
            dimension_numbers=("NHWC", "HWIO", "NHWC"))
        x = jnp.maximum(x + b, 0.0)
    return jnp.transpose(x, (0, 3, 1, 2)).reshape(x.shape[0], -1)


if __name__ == "__main__":
    key = jax.random.PRNGKey(0)
    k_obs, k_par = jax.random.split(key)

    obs_shape = (4, 16, 16)          # (C, H, W); small stand-in for e.g. (9, 84, 84)
    batch = 2
    obs = jax.random.randint(
        k_obs, (batch,) + obs_shape, 0, 256, dtype=jnp.int32).astype(jnp.uint8)

    params = init_encoder_params(obs_shape, k_par)

    h = jax.block_until_ready(encoder_forward(obs, params))
    h_ref = jax.block_until_ready(encoder_reference(obs, params))

    assert h.shape == (batch, 32 * 1 * 1), h.shape
    np.testing.assert_allclose(np.asarray(h), np.asarray(h_ref), rtol=1e-3, atol=1e-3)

    print("KERNEL_OK")
</pallas_src>

<mosaic_0001>
module attributes {stable_mosaic.version = 11 : i64} {
  func.func @_fused_encoder_kernel(%arg0: i32, %arg1: memref<1x56x128xi8, #tpu.memory_space<vmem>>, %arg2: memref<128x32xf32, #tpu.memory_space<vmem>>, %arg3: memref<864x32xf32, #tpu.memory_space<vmem>>, %arg4: memref<4x32xf32, #tpu.memory_space<vmem>>, %arg5: memref<1x32x128xf32, #tpu.memory_space<vmem>>, %arg6: memref<128x32xf32, #tpu.memory_space<vmem>>, %arg7: memref<128x32xf32, #tpu.memory_space<vmem>>) attributes {dimension_semantics = [#tpu.dimension_semantics<parallel>], iteration_bounds = array<i64: 2>, scalar_prefetch = 0 : i64, scratch_operands = 2 : i64, tpu.core_type = #tpu.core_type<tc>, window_params = [{transform_indices = @transform_0, window_bounds = array<i64: 1, 56, 128>}, {pipeline_mode = #tpu.pipeline_mode<synchronous>, transform_indices = @transform_1, window_bounds = array<i64: 128, 32>}, {pipeline_mode = #tpu.pipeline_mode<synchronous>, transform_indices = @transform_2, window_bounds = array<i64: 864, 32>}, {pipeline_mode = #tpu.pipeline_mode<synchronous>, transform_indices = @transform_3, window_bounds = array<i64: 4, 32>}, {transform_indices = @transform_4, window_bounds = array<i64: 1, 32, 128>}]} {
    %cst = arith.constant 0.000000e+00 : f32
    %0 = vector.broadcast %cst : f32 to vector<72x32xf32>
    %c56 = arith.constant 56 : index
    %c0 = arith.constant 0 : index
    %1 = vector.load %arg6[%c56, %c0] : memref<128x32xf32, #tpu.memory_space<vmem>>, vector<72x32xf32>
    tpu.vector_store %arg6[%c56, %c0], %0 {strides = array<i32>} : memref<128x32xf32, #tpu.memory_space<vmem>>, vector<72x32xf32>,
    %c56_0 = arith.constant 56 : index
    %c0_1 = arith.constant 0 : index
    %2 = vector.load %arg7[%c56_0, %c0_1] : memref<128x32xf32, #tpu.memory_space<vmem>>, vector<72x32xf32>
    tpu.vector_store %arg7[%c56_0, %c0_1], %0 {strides = array<i32>} : memref<128x32xf32, #tpu.memory_space<vmem>>, vector<72x32xf32>,
    %c0_2 = arith.constant 0 : index
    %c0_3 = arith.constant 0 : index
    %c0_4 = arith.constant 0 : index
    %3 = vector.load %arg1[%c0_2, %c0_3, %c0_4] : memref<1x56x128xi8, #tpu.memory_space<vmem>>, vector<1x56x128xi8>
    %4 = vector.shape_cast %3 : vector<1x56x128xi8> to vector<56x128xi8>
    %5 = arith.uitofp %4 : vector<56x128xi8> to vector<56x128xf32>
    %c0_5 = arith.constant 0 : index
    %c0_6 = arith.constant 0 : index
    %6 = vector.load %arg2[%c0_5, %c0_6] : memref<128x32xf32, #tpu.memory_space<vmem>>, vector<128x32xf32>
    %cst_7 = arith.constant dense<0.000000e+00> : vector<56x32xf32>
    %7 = tpu.matmul %5, %6, %cst_7 {dimension_numbers = #tpu.dot_dimension_numbers<[1], [0], [0], [1], [0, 0, 1, 1], [], []>} : vector<56x128xf32>, vector<128x32xf32>, vector<56x32xf32> -> vector<56x32xf32>
    %c0_8 = arith.constant 0 : index
    %c0_9 = arith.constant 0 : index
    %8 = vector.load %arg4[%c0_8, %c0_9] : memref<4x32xf32, #tpu.memory_space<vmem>>, vector<1x32xf32>
    %9 = vector.broadcast %8 : vector<1x32xf32> to vector<56x32xf32>
    %10 = arith.addf %7, %9 : vector<56x32xf32>
    %cst_10 = arith.constant 0.000000e+00 : f32
    %11 = vector.broadcast %cst_10 : f32 to vector<56x32xf32>
    %12 = arith.maximumf %10, %11 : vector<56x32xf32>
    %c0_11 = arith.constant 0 : index
    %c0_12 = arith.constant 0 : index
    %13 = vector.load %arg6[%c0_11, %c0_12] : memref<128x32xf32, #tpu.memory_space<vmem>>, vector<56x32xf32>
    tpu.vector_store %arg6[%c0_11, %c0_12], %12 {strides = array<i32>} : memref<128x32xf32, #tpu.memory_space<vmem>>, vector<56x32xf32>,
    %c0_13 = arith.constant 0 : index
    %c0_14 = arith.constant 0 : index
    %14 = vector.load %arg6[%c0_13, %c0_14] : memref<128x32xf32, #tpu.memory_space<vmem>>, vector<56x32xf32>
    %c1 = arith.constant 1 : index
    %c0_15 = arith.constant 0 : index
    %15 = vector.load %arg6[%c1, %c0_15] : memref<128x32xf32, #tpu.memory_space<vmem>>, vector<56x32xf32>
    %c2 = arith.constant 2 : index
    %c0_16 = arith.constant 0 : index
    %16 = vector.load %arg6[%c2, %c0_16] : memref<128x32xf32, #tpu.memory_space<vmem>>, vector<56x32xf32>
    %c8 = arith.constant 8 : index
    %c0_17 = arith.constant 0 : index
    %17 = vector.load %arg6[%c8, %c0_17] : memref<128x32xf32, #tpu.memory_space<vmem>>, vector<56x32xf32>
    %c9 = arith.constant 9 : index
    %c0_18 = arith.constant 0 : index
    %18 = vector.load %arg6[%c9, %c0_18] : memref<128x32xf32, #tpu.memory_space<vmem>>, vector<56x32xf32>
    %c10 = arith.constant 10 : index
    %c0_19 = arith.constant 0 : index
    %19 = vector.load %arg6[%c10, %c0_19] : memref<128x32xf32, #tpu.memory_space<vmem>>, vector<56x32xf32>
    %c16 = arith.constant 16 : index
    %c0_20 = arith.constant 0 : index
    %20 = vector.load %arg6[%c16, %c0_20] : memref<128x32xf32, #tpu.memory_space<vmem>>, vector<56x32xf32>
    %c17 = arith.constant 17 : index
    %c0_21 = arith.constant 0 : index
    %21 = vector.load %arg6[%c17, %c0_21] : memref<128x32xf32, #tpu.memory_space<vmem>>, vector<56x32xf32>
    %c18 = arith.constant 18 : index
    %c0_22 = arith.constant 0 : index
    %22 = vector.load %arg6[%c18, %c0_22] : memref<128x32xf32, #tpu.memory_space<vmem>>, vector<56x32xf32>
    %23 = tpu.concatenate %14, %15, %16, %17, %18, %19, %20, %21, %22 in 1 : vector<56x32xf32>, vector<56x32xf32>, vector<56x32xf32>, vector<56x32xf32>, vector<56x32xf32>, vector<56x32xf32>, vector<56x32xf32>, vector<56x32xf32>, vector<56x32xf32> -> vector<56x288xf32>
    %c0_23 = arith.constant 0 : index
    %c0_24 = arith.constant 0 : index
    %24 = vector.load %arg3[%c0_23, %c0_24] : memref<864x32xf32, #tpu.memory_space<vmem>>, vector<288x32xf32>
    %cst_25 = arith.constant dense<0.000000e+00> : vector<56x32xf32>
    %25 = tpu.matmul %23, %24, %cst_25 {dimension_numbers = #tpu.dot_dimension_numbers<[1], [0], [0], [1], [0, 0, 1, 1], [], []>} : vector<56x288xf32>, vector<288x32xf32>, vector<56x32xf32> -> vector<56x32xf32>
    %c1_26 = arith.constant 1 : index
    %c0_27 = arith.constant 0 : index
    %26 = vector.load %arg4[%c1_26, %c0_27] : memref<4x32xf32, #tpu.memory_space<vmem>>, vector<1x32xf32>
    %27 = vector.broadcast %26 : vector<1x32xf32> to vector<56x32xf32>
    %28 = arith.addf %25, %27 : vector<56x32xf32>
    %cst_28 = arith.constant 0.000000e+00 : f32
    %29 = vector.broadcast %cst_28 : f32 to vector<56x32xf32>
    %30 = arith.maximumf %28, %29 : vector<56x32xf32>
    %c0_29 = arith.constant 0 : index
    %c0_30 = arith.constant 0 : index
    %31 = vector.load %arg7[%c0_29, %c0_30] : memref<128x32xf32, #tpu.memory_space<vmem>>, vector<56x32xf32>
    tpu.vector_store %arg7[%c0_29, %c0_30], %30 {strides = array<i32>} : memref<128x32xf32, #tpu.memory_space<vmem>>, vector<56x32xf32>,
    %c0_31 = arith.constant 0 : index
    %c0_32 = arith.constant 0 : index
    %32 = vector.load %arg7[%c0_31, %c0_32] : memref<128x32xf32, #tpu.memory_space<vmem>>, vector<56x32xf32>
    %c1_33 = arith.constant 1 : index
    %c0_34 = arith.constant 0 : index
    %33 = vector.load %arg7[%c1_33, %c0_34] : memref<128x32xf32, #tpu.memory_space<vmem>>, vector<56x32xf32>
    %c2_35 = arith.constant 2 : index
    %c0_36 = arith.constant 0 : index
    %34 = vector.load %arg7[%c2_35, %c0_36] : memref<128x32xf32, #tpu.memory_space<vmem>>, vector<56x32xf32>
    %c8_37 = arith.constant 8 : index
    %c0_38 = arith.constant 0 : index
    %35 = vector.load %arg7[%c8_37, %c0_38] : memref<128x32xf32, #tpu.memory_space<vmem>>, vector<56x32xf32>
    %c9_39 = arith.constant 9 : index
    %c0_40 = arith.constant 0 : index
    %36 = vector.load %arg7[%c9_39, %c0_40] : memref<128x32xf32, #tpu.memory_space<vmem>>, vector<56x32xf32>
    %c10_41 = arith.constant 10 : index
    %c0_42 = arith.constant 0 : index
    %37 = vector.load %arg7[%c10_41, %c0_42] : memref<128x32xf32, #tpu.memory_space<vmem>>, vector<56x32xf32>
    %c16_43 = arith.constant 16 : index
    %c0_44 = arith.constant 0 : index
    %38 = vector.load %arg7[%c16_43, %c0_44] : memref<128x32xf32, #tpu.memory_space<vmem>>, vector<56x32xf32>
    %c17_45 = arith.constant 17 : index
    %c0_46 = arith.constant 0 : index
    %39 = vector.load %arg7[%c17_45, %c0_46] : memref<128x32xf32, #tpu.memory_space<vmem>>, vector<56x32xf32>
    %c18_47 = arith.constant 18 : index
    %c0_48 = arith.constant 0 : index
    %40 = vector.load %arg7[%c18_47, %c0_48] : memref<128x32xf32, #tpu.memory_space<vmem>>, vector<56x32xf32>
    %41 = tpu.concatenate %32, %33, %34, %35, %36, %37, %38, %39, %40 in 1 : vector<56x32xf32>, vector<56x32xf32>, vector<56x32xf32>, vector<56x32xf32>, vector<56x32xf32>, vector<56x32xf32>, vector<56x32xf32>, vector<56x32xf32>, vector<56x32xf32> -> vector<56x288xf32>
    %c288 = arith.constant 288 : index
    %c0_49 = arith.constant 0 : index
    %42 = vector.load %arg3[%c288, %c0_49] : memref<864x32xf32, #tpu.memory_space<vmem>>, vector<288x32xf32>
    %cst_50 = arith.constant dense<0.000000e+00> : vector<56x32xf32>
    %43 = tpu.matmul %41, %42, %cst_50 {dimension_numbers = #tpu.dot_dimension_numbers<[1], [0], [0], [1], [0, 0, 1, 1], [], []>} : vector<56x288xf32>, vector<288x32xf32>, vector<56x32xf32> -> vector<56x32xf32>
    %c2_51 = arith.constant 2 : index
    %c0_52 = arith.constant 0 : index
    %44 = vector.load %arg4[%c2_51, %c0_52] : memref<4x32xf32, #tpu.memory_space<vmem>>, vector<1x32xf32>
    %45 = vector.broadcast %44 : vector<1x32xf32> to vector<56x32xf32>
    %46 = arith.addf %43, %45 : vector<56x32xf32>
    %cst_53 = arith.constant 0.000000e+00 : f32
    %47 = vector.broadcast %cst_53 : f32 to vector<56x32xf32>
    %48 = arith.maximumf %46, %47 : vector<56x32xf32>
    %c0_54 = arith.constant 0 : index
    %c0_55 = arith.constant 0 : index
    %49 = vector.load %arg6[%c0_54, %c0_55] : memref<128x32xf32, #tpu.memory_space<vmem>>, vector<56x32xf32>
    tpu.vector_store %arg6[%c0_54, %c0_55], %48 {strides = array<i32>} : memref<128x32xf32, #tpu.memory_space<vmem>>, vector<56x32xf32>,
    %c0_56 = arith.constant 0 : index
    %c0_57 = arith.constant 0 : index
    %50 = vector.load %arg6[%c0_56, %c0_57] : memref<128x32xf32, #tpu.memory_space<vmem>>, vector<56x32xf32>
    %c1_58 = arith.constant 1 : index
    %c0_59 = arith.constant 0 : index
    %51 = vector.load %arg6[%c1_58, %c0_59] : memref<128x32xf32, #tpu.memory_space<vmem>>, vector<56x32xf32>
    %c2_60 = arith.constant 2 : index
    %c0_61 = arith.constant 0 : index
    %52 = vector.load %arg6[%c2_60, %c0_61] : memref<128x32xf32, #tpu.memory_space<vmem>>, vector<56x32xf32>
    %c8_62 = arith.constant 8 : index
    %c0_63 = arith.constant 0 : index
    %53 = vector.load %arg6[%c8_62, %c0_63] : memref<128x32xf32, #tpu.memory_space<vmem>>, vector<56x32xf32>
    %c9_64 = arith.constant 9 : index
    %c0_65 = arith.constant 0 : index
    %54 = vector.load %arg6[%c9_64, %c0_65] : memref<128x32xf32, #tpu.memory_space<vmem>>, vector<56x32xf32>
    %c10_66 = arith.constant 10 : index
    %c0_67 = arith.constant 0 : index
    %55 = vector.load %arg6[%c10_66, %c0_67] : memref<128x32xf32, #tpu.memory_space<vmem>>, vector<56x32xf32>
    %c16_68 = arith.constant 16 : index
    %c0_69 = arith.constant 0 : index
    %56 = vector.load %arg6[%c16_68, %c0_69] : memref<128x32xf32, #tpu.memory_space<vmem>>, vector<56x32xf32>
    %c17_70 = arith.constant 17 : index
    %c0_71 = arith.constant 0 : index
    %57 = vector.load %arg6[%c17_70, %c0_71] : memref<128x32xf32, #tpu.memory_space<vmem>>, vector<56x32xf32>
    %c18_72 = arith.constant 18 : index
    %c0_73 = arith.constant 0 : index
    %58 = vector.load %arg6[%c18_72, %c0_73] : memref<128x32xf32, #tpu.memory_space<vmem>>, vector<56x32xf32>
    %59 = tpu.concatenate %50, %51, %52, %53, %54, %55, %56, %57, %58 in 1 : vector<56x32xf32>, vector<56x32xf32>, vector<56x32xf32>, vector<56x32xf32>, vector<56x32xf32>, vector<56x32xf32>, vector<56x32xf32>, vector<56x32xf32>, vector<56x32xf32> -> vector<56x288xf32>
    %c576 = arith.constant 576 : index
    %c0_74 = arith.constant 0 : index
    %60 = vector.load %arg3[%c576, %c0_74] : memref<864x32xf32, #tpu.memory_space<vmem>>, vector<288x32xf32>
    %cst_75 = arith.constant dense<0.000000e+00> : vector<56x32xf32>
    %61 = tpu.matmul %59, %60, %cst_75 {dimension_numbers = #tpu.dot_dimension_numbers<[1], [0], [0], [1], [0, 0, 1, 1], [], []>} : vector<56x288xf32>, vector<288x32xf32>, vector<56x32xf32> -> vector<56x32xf32>
    %c3 = arith.constant 3 : index
    %c0_76 = arith.constant 0 : index
    %62 = vector.load %arg4[%c3, %c0_76] : memref<4x32xf32, #tpu.memory_space<vmem>>, vector<1x32xf32>
    %63 = vector.broadcast %62 : vector<1x32xf32> to vector<56x32xf32>
    %64 = arith.addf %61, %63 : vector<56x32xf32>
    %cst_77 = arith.constant 0.000000e+00 : f32
    %65 = vector.broadcast %cst_77 : f32 to vector<56x32xf32>
    %66 = arith.maximumf %64, %65 : vector<56x32xf32>
    %c0_78 = arith.constant 0 : index
    %c0_79 = arith.constant 0 : index
    %67 = vector.load %arg7[%c0_78, %c0_79] : memref<128x32xf32, #tpu.memory_space<vmem>>, vector<56x32xf32>
    tpu.vector_store %arg7[%c0_78, %c0_79], %66 {strides = array<i32>} : memref<128x32xf32, #tpu.memory_space<vmem>>, vector<56x32xf32>,
    %c0_80 = arith.constant 0 : index
    %c0_81 = arith.constant 0 : index
    %68 = vector.load %arg7[%c0_80, %c0_81] : memref<128x32xf32, #tpu.memory_space<vmem>>, vector<128x32xf32>
    %69 = tpu.transpose %68, [1, 0] : vector<128x32xf32> -> vector<32x128xf32>
    %c0_82 = arith.constant 0 : index
    %c0_83 = arith.constant 0 : index
    %c0_84 = arith.constant 0 : index
    %70 = vector.load %arg5[%c0_82, %c0_83, %c0_84] : memref<1x32x128xf32, #tpu.memory_space<vmem>>, vector<1x32x128xf32>
    %71 = vector.shape_cast %70 : vector<1x32x128xf32> to vector<32x128xf32>
    %72 = vector.shape_cast %69 : vector<32x128xf32> to vector<1x32x128xf32>
    tpu.vector_store %arg5[%c0_82, %c0_83, %c0_84], %72 {strides = array<i32>} : memref<1x32x128xf32, #tpu.memory_space<vmem>>, vector<1x32x128xf32>,
    return
  }
  func.func @transform_0(%arg0: i32) -> (i32, i32, i32) {
    %c0_i32 = arith.constant 0 : i32
    %c0_i32_0 = arith.constant 0 : i32
    %c0_i32_1 = arith.constant 0 : i32
    return %arg0, %c0_i32, %c0_i32_0 : i32, i32, i32
  }
  func.func @transform_1(%arg0: i32) -> (i32, i32) {
    %c0_i32 = arith.constant 0 : i32
    %c0_i32_0 = arith.constant 0 : i32
    %c0_i32_1 = arith.constant 0 : i32
    return %c0_i32, %c0_i32_0 : i32, i32
  }
  func.func @transform_2(%arg0: i32) -> (i32, i32) {
    %c0_i32 = arith.constant 0 : i32
    %c0_i32_0 = arith.constant 0 : i32
    %c0_i32_1 = arith.constant 0 : i32
    return %c0_i32, %c0_i32_0 : i32, i32
  }
  func.func @transform_3(%arg0: i32) -> (i32, i32) {
    %c0_i32 = arith.constant 0 : i32
    %c0_i32_0 = arith.constant 0 : i32
    %c0_i32_1 = arith.constant 0 : i32
    return %c0_i32, %c0_i32_0 : i32, i32
  }
  func.func @transform_4(%arg0: i32) -> (i32, i32, i32) {
    %c0_i32 = arith.constant 0 : i32
    %c0_i32_0 = arith.constant 0 : i32
    %c0_i32_1 = arith.constant 0 : i32
    return %arg0, %c0_i32, %c0_i32_0 : i32, i32, i32
  }
}

</mosaic_0001>

<bundles_post_ra>
// kernel: tpu_custom_call.1
= control target key start
LH: loop header
LB: loop body
LE: loop exit
PB: predicated region body
PF: predicated region fallthrough
CT: control target
= control target key end

     0   :  { %9 = vsyncpa [#allocation5], 0  ;;  %s3095_s0 = inlined_call_operand.vmem [shape: u8[2,56,128], index: 0, kind: input, shape index: {}]   ;;  %s3096_s1 = inlined_call_operand.vmem [shape: f32[128,32], index: 1, kind: input, shape index: {}]   ;;  %s3097_s2 = inlined_call_operand.vmem [shape: f32[864,32], index: 2, kind: input, shape index: {}]   ;;  %s3098_s3 = inlined_call_operand.vmem [shape: f32[4,32], index: 3, kind: input, shape index: {}]   ;;  %s3099_s4 = inlined_call_operand.hbm [shape: f32[2,32,128], index: 4, kind: output, shape index: {}]  }
   0x1   :  { %11 = vsyncpa [#allocation5 + $0x1], 0  ;;  %s2145_s15 = smov 0   ;;  %s2147_s16 = smov 0  }
   0x2   :  { %s2149_s17 = smov 0   ;;  %s2151_s18 = smov 0  }
   0x3 LB: > { %s2166_s19 = sadd.s32 4294967295, %s2112_s18   ;;  %s1648_s20 = sadd.s32 4294967294, %s2112_s18   ;;  %s2112_s18 = sphi %s2151_s18, %s3105_s18   ;;  %s2108_s17 = sphi %s2149_s17, %s3104_s17   ;;  %s2104_s16 = sphi %s2147_s16, %s3103_s16   ;;  %s2100_s15 = sphi %s2145_s15, %s3102_s15  }
   0x4   : > { %s2170_s21 = sadd.s32 1, %s2112_s18   ;;  %s113_s22 = sadd.s32 1, %s2108_s17 }
   0x5   : > { %s110_s23 = ssub.s32 %s2112_s18, %s2170_s21  ;;  %p123_p0 = scmp.ne.s32.totalorder %s2108_s17, %s2104_s16 }
   0x6   : > { %p111_p1 = scmp.eq.s32.totalorder %s110_s23, 0  ;;  %p124_p2 = scmp.eq.s32.totalorder %s2166_s19, 1 }
   0x7   : > { %p129_p3 = scmp.ne.s32.totalorder %s2104_s16, %s2100_s15  ;;  %p130_p4 = scmp.eq.s32.totalorder %s1648_s20, 1 }
   0x8   : > { %s2181_s24 = scalar_select %p111_p1, %s2108_s17, %s113_s22  }
   0x9   : > { %p2183_p5 = por %p124_p2, %p123_p0  ;;  %p2187_p6 = por %p130_p4, %p129_p3 }
   0xa   : > { %p1651_p7 = scmp.ge.s32.totalorder %s2112_s18, 1  ;;  %p165_p8 = scmp.lt.s32.totalorder %s2112_s18, 3 }
   0xc   : > { %p166_p9 = pnand %p1651_p7, %p165_p8 }
   0xd   : > { %p191_p10 = scmp.lt.s32.totalorder (!%p166_p9), %s2166_s19, 1  ;;  %s2115_s14 = smov (!%p166_p9), 32  }
   0xe   : > { %169 = sbr.rel (%p166_p9) target bundleno = 1261 (0x4ed), region = 36  ;;  %s2116_s20 = smov (!%p166_p9), 64  }
   0xf   : > { %s188_s9 = sand.u32 (!%p166_p9), 1, %s2104_s16   ;;  %s1680_s12 = sshll.u32 (!%p166_p9), %s2166_s19, 5 }
  0x10   : > { %s1652_s10 = sshll.u32 (!%p166_p9), %s188_s9, 5  ;;  %s1582_s27 = scalar_lea.hbm (!%p166_p9), %s3099_s4, %s1680_s12 }
  0x11   : > { %s1585_s29 = sshll.u32 (!%p166_p9), %s1582_s27, 4  ;;  %s1571_s30 = scalar_lea.sflag (!%p166_p9), [#allocation5], %s188_s9  ;;  %s1586_s29 = int_to_ptr.hbm [resolvable:$true] %s1585_s29 }
  0x12   : > { %s2064_s5 = sshra.s32 (!%p166_p9), %s1586_s29, 4  ;;  %s2065_s5 = int_to_ptr.hbm [resolvable:$true] %s2064_s5 }
  0x13   : > { %v258_v0 = vld [vmem:[%s3096_s1 + $0x78] sm:$0xff]  ;;  %v257_v1 = vld [vmem:[%s3096_s1 + $0x70] sm:$0xff]  ;;  %v256_v2 = vld [vmem:[%s3096_s1 + $0x68] sm:$0xff]  ;;  %s192_s11 = scalar_select %p191_p10, %s2166_s19, 1  ;;  %vm196_vm0 = vcmask 261120   ;;  %v2114_v63 = vmov 0.0  }
  0x14   : > { %261 = vmatpush.msra.mxu0 %v258_v0  ;;  %1693 = vmatpush.msra.mxu1 %v258_v0  ;;  %v255_v3 = vld [vmem:[%s3096_s1 + $0x60] sm:$0xff]  ;;  %v254_v4 = vld [vmem:[%s3096_s1 + $0x58] sm:$0xff]  ;;  %v253_v5 = vld [vmem:[%s3096_s1 + $0x50] sm:$0xff]  ;;  %197 = vst.msk [vmem:[#allocation2 + $0x38] sm:$0xff] %vm196_vm0, %v2114_v63  ;;  %vm498_vm1 = vcmask 523264   ;;  %vm506_vm2 = vcmask 785408   ;;  %p2071_p0 = scmp.lt.s32.totalorder %s2065_s5, %s3099_s4 }
  0x15   : > { %v252_v6 = vld [vmem:[%s3096_s1 + $0x48] sm:$0xff]  ;;  %s1715_s22 = smul.u32 14, %s192_s11  ;;  %v251_v7 = vld [vmem:[%s3096_s1 + $0x40] sm:$0xff]  ;;  %v250_v8 = vld [vmem:[%s3096_s1 + $0x38] sm:$0xff]  ;;  %198 = vst.msk [vmem:[#allocation2 + $0x40] sm:$0xff] %vm196_vm0, %v2114_v63  ;;  %s190_s11 = scalar_lea.vmem [#allocation4], %s1652_s10 }
  0x16   : > { %262 = vmatpush.msra.mxu0 %v257_v1  ;;  %1694 = vmatpush.msra.mxu1 %v257_v1  ;;  %v249_v9 = vld [vmem:[%s3096_s1 + $0x30] sm:$0xff]  ;;  %v248_v12 = vld [vmem:[%s3096_s1 + $0x28] sm:$0xff]  ;;  %v247_v13 = vld [vmem:[%s3096_s1 + $0x20] sm:$0xff]  ;;  %199 = vst.msk [vmem:[#allocation2 + $0x48] sm:$0xff] %vm196_vm0, %v2114_v63  ;;  %s1583_s28 = sshll.u32 %s190_s11, 4  ;;  %s1584_s28 = int_to_ptr.vmem [resolvable:$true] %s1583_s28 }
  0x17   : > { %s2225_s6 = scalar_lea.vmem %s3095_s0, %s1715_s22  ;;  %v246_v16 = vld [vmem:[%s3096_s1 + $0x18] sm:$0xff]  ;;  %v245_v17 = vld [vmem:[%s3096_s1 + $0x10] sm:$0xff]  ;;  %v244_v20 = vld [vmem:[%s3096_s1 + $0x8] sm:$0xff]  ;;  %206 = vst.msk [vmem:[#allocation3 + $0x38] sm:$0xff] %vm196_vm0, %v2114_v63  ;;  %s2117_s22 = smov 96  }
  0x18   : > { %263 = vmatpush.msra.mxu0 %v256_v2  ;;  %1695 = vmatpush.msra.mxu1 %v256_v2  ;;  %v1682_v10 = vld [vmem:[%s2225_s6] sm:$0xff]   ;;  %v1714_v11 = vld [vmem:[%s2225_s6 + $0x8] sm:$0xf]   ;;  %v221_v28 = vld [vmem:[%s2225_s6 + $0xc] sm:$0x3]  ;;  %207 = vst.msk [vmem:[#allocation3 + $0x40] sm:$0xff] %vm196_vm0, %v2114_v63 }
  0x19   : > { %v1683_v14 = vunpack.c.0.s8 %v1682_v10  ;;  %v1691_v15 = vunpack.c.0.s8 %v1714_v11  ;;  %v243_v21 = vld [vmem:[%s3096_s1] sm:$0xff]  ;;  %v1684_v23 = vunpack.c.1.s8 %v1682_v10  ;;  %v1692_v25 = vunpack.c.1.s8 %v1714_v11  ;;  %v570_v41 = vld [vmem:[%s3097_s2 + $0x118] sm:$0xff]  ;;  %v569_v42 = vld [vmem:[%s3097_s2 + $0x110] sm:$0xff]  ;;  %208 = vst.msk [vmem:[#allocation3 + $0x48] sm:$0xff] %vm196_vm0, %v2114_v63  ;;  %s2066_s6 = scalar_lea.hbm %s2065_s5, 32 }
  0x1a   : > { %264 = vmatpush.msra.mxu0 %v255_v3  ;;  %1696 = vmatpush.msra.mxu1 %v255_v3  ;;  %v1687_v30 = vunpack.c.2.s8 %v1682_v10  ;;  %v228_v32 = vunpack.c.0.s8 %v221_v28  ;;  %v1688_v36 = vunpack.c.3.s8 %v1682_v10  ;;  %v2046_v40 = vld [vmem:[%s3098_s3] ss:$0 sm:$0xff]  ;;  %v568_v43 = vld [vmem:[%s3097_s2 + $0x108] sm:$0xff]  ;;  %209 = vst.msk [vmem:[#allocation3 + $0x50] sm:$0xff] %vm196_vm0, %v2114_v63  ;;  %v566_v28 = vld [vmem:[%s3097_s2 + $0xf8] sm:$0xff]  ;;  %p2067_p11 = scmp.ne.s32.totalorder %s2065_s5, %s2066_s6 }
  0x1b   : > { %v229_v18 = vand.u32 255, %v1683_v14  ;;  %v233_v19 = vand.u32 255, %v1691_v15  ;;  %v230_v26 = vand.u32 255, %v1684_v23  ;;  %v234_v27 = vand.u32 255, %v1692_v25  ;;  %676 = vmatpush.msra.mxu3 %v570_v41  ;;  %v567_v48 = vld [vmem:[%s3097_s2 + $0x100] sm:$0xff]  ;;  %210 = vst.msk [vmem:[#allocation3 + $0x58] sm:$0xff] %vm196_vm0, %v2114_v63  ;;  %626 = vmatpush.msra.mxu2 %v566_v28 }
  0x1c   : > { %265 = vmatpush.msra.mxu0 %v254_v4  ;;  %1697 = vmatpush.msra.mxu1 %v254_v4  ;;  %v231_v33 = vand.u32 255, %v1687_v30  ;;  %v235_v34 = vand.u32 255, %v228_v32  ;;  %v232_v38 = vand.u32 255, %v1688_v36  ;;  %211 = vst.msk [vmem:[#allocation3 + $0x60] sm:$0xff] %vm196_vm0, %v2114_v63  ;;  %v565_v30 = vld [vmem:[%s3097_s2 + $0xf0] sm:$0xff]  ;;  %p2068_p12 = pnand %p2067_p11, %p2183_p5 }
  0x1d   : > { %v236_v22 = vcvt.s32.f32 %v229_v18  ;;  %v240_v24 = vcvt.s32.f32 %v233_v19  ;;  %v237_v29 = vcvt.s32.f32 %v230_v26  ;;  %v241_v31 = vcvt.s32.f32 %v234_v27  ;;  %677 = vmatpush.msra.mxu3 %v569_v42  ;;  %212 = vst.msk [vmem:[#allocation3 + $0x68] sm:$0xff] %vm196_vm0, %v2114_v63  ;;  %v550_v27 = vld [vmem:[%s3097_s2 + $0x78] sm:$0xff]  ;;  %627 = vmatpush.msra.mxu2 %v565_v30 }
  0x1e   : > { %266 = vmatpush.msra.mxu0 %v253_v5  ;;  %1698 = vmatpush.msra.mxu1 %v253_v5  ;;  %v238_v35 = vcvt.s32.f32 %v231_v33  ;;  %v242_v37 = vcvt.s32.f32 %v235_v34  ;;  %v239_v39 = vcvt.s32.f32 %v232_v38  ;;  %213 = vst.msk [vmem:[#allocation3 + $0x70] sm:$0xff] %vm196_vm0, %v2114_v63  ;;  %p2069_p13 = pneg %p2068_p12 }
  0x1f   : > { %678 = vmatpush.msra.mxu3 %v568_v43  ;;  %214 = vst.msk [vmem:[#allocation3 + $0x78] sm:$0xff] %vm196_vm0, %v2114_v63  ;;  %v2362_v43 = vld [vmem:[#allocation2 + $0x39] sm:$0xff] }
  0x20   : > { %267 = vmatpush.msra.mxu0 %v252_v6  ;;  %1699 = vmatpush.msra.mxu1 %v252_v6  ;;  %v559_v63 = vld [vmem:[%s3097_s2 + $0xc0] sm:$0xff] }
  0x21   : > { %679 = vmatpush.msra.mxu3 %v567_v48 }
  0x22   : > { %268 = vmatpush.msra.mxu0 %v251_v7  ;;  %1700 = vmatpush.msra.mxu1 %v251_v7 }
  0x24   : > { %269 = vmatpush.msra.mxu0 %v250_v8  ;;  %1701 = vmatpush.msra.mxu1 %v250_v8 }
  0x26   : > { %270 = vmatpush.msra.mxu0 %v249_v9  ;;  %1702 = vmatpush.msra.mxu1 %v249_v9 }
  0x28   : > { %271 = vmatpush.msra.mxu0 %v248_v12  ;;  %1703 = vmatpush.msra.mxu1 %v248_v12 }
  0x2a   : > { %272 = vmatpush.msra.mxu0 %v247_v13  ;;  %1704 = vmatpush.msra.mxu1 %v247_v13 }
  0x2c   : > { %273 = vmatpush.msra.mxu0 %v246_v16  ;;  %1705 = vmatpush.msra.mxu1 %v246_v16 }
  0x2e   : > { %274 = vmatpush.msra.mxu0 %v245_v17  ;;  %1706 = vmatpush.msra.mxu1 %v245_v17 }
  0x30   : > { %275 = vmatpush.msra.mxu0 %v244_v20  ;;  %1707 = vmatpush.msra.mxu1 %v244_v20 }
  0x32   : > { %276 = vmatpush.msra.mxu0 %v243_v21  ;;  %1708 = vmatpush.msra.mxu1 %v243_v21 }
  0x33   : > { %277 = vmatmul.f32.vlgmr.msra.gmra.mxu0 %v236_v22  ;;  %289 = vmatmul.f32.vlgmr.msra.gmra.mxu1 %v240_v24 }
  0x34   : > { %588 = vmatpush.msrb.mxu1 %v550_v27 }
  0x3b   : > { %280 = vmatmul.f32.gmra.mxu0 %v237_v29  ;;  %292 = vmatmul.f32.gmra.mxu1 %v241_v31  ;;  %v549_v29 = vld [vmem:[%s3097_s2 + $0x70] sm:$0xff] }
  0x3c   : > { %589 = vmatpush.msrb.mxu1 %v549_v29 }
  0x43   : > { %283 = vmatmul.f32.gmra.mxu0 %v238_v35  ;;  %295 = vmatmul.f32.gmra.mxu1 %v242_v37 }
  0x4b   : > { %286 = vmatmul.f32.gmra.mxu0 %v239_v39 }
  0xb0   : > { %v278_v44 = vpop.f32.mrf.mxu0  ;;  %v290_v45 = vpop.f32.mrf.mxu1 }
  0xb1   : > { %v279_v46 = vadd.f32 %v2046_v40, %v278_v44  ;;  %v291_v47 = vadd.f32 %v2046_v40, %v290_v45  ;;  %v334_v44 = vld [vmem:[#allocation2 + $0x38] sm:$0xff] }
  0xb2   : > { %v336_v45 = vld [vmem:[#allocation2 + $0x3a] sm:$0xff] }
  0xb3   : > { %v299_v49 = vmax.f32 %v279_v46, 0.0  ;;  %v303_v50 = vmax.f32 %v291_v47, 0.0 }
  0xb5   : > { %306 = vst.msk [vmem:[#allocation2] sm:$0xff] %vm196_vm0, %v299_v49  ;;  %v337_v49 = vld [vmem:[#allocation2 + $0x40] sm:$0xff] }
  0xb6   : > { %310 = vst.msk [vmem:[#allocation2 + $0x20] sm:$0xff] %vm196_vm0, %v303_v50  ;;  %v338_v50 = vld [vmem:[#allocation2 + $0x41] sm:$0xff] }
  0xb8   : > { %v281_v51 = vpop.f32.mrf.mxu0  ;;  %v293_v52 = vpop.f32.mrf.mxu1 }
  0xb9   : > { %v282_v53 = vadd.f32 %v2046_v40, %v281_v51  ;;  %v294_v54 = vadd.f32 %v2046_v40, %v293_v52  ;;  %v548_v52 = vld [vmem:[%s3097_s2 + $0x68] sm:$0xff] }
  0xba   : > { %590 = vmatpush.msrb.mxu1 %v548_v52 }
  0xbb   : > { %v300_v55 = vmax.f32 %v282_v53, 0.0  ;;  %v304_v56 = vmax.f32 %v294_v54, 0.0  ;;  %v564_v53 = vld [vmem:[%s3097_s2 + $0xe8] sm:$0xff]  ;;  %v547_v54 = vld [vmem:[%s3097_s2 + $0x60] sm:$0xff] }
  0xbc   : > { %628 = vmatpush.msra.mxu2 %v564_v53  ;;  %591 = vmatpush.msrb.mxu1 %v547_v54 }
  0xbd   : > { %307 = vst.msk [vmem:[#allocation2 + $0x8] sm:$0xff] %vm196_vm0, %v300_v55  ;;  %v2316_v22 = vld [vmem:[#allocation2 + $0x20] sm:$0xff] }
  0xbe   : > { %311 = vst.msk [vmem:[#allocation2 + $0x28] sm:$0xff] %vm196_vm0, %v304_v56  ;;  %v563_v55 = vld [vmem:[%s3097_s2 + $0xe0] sm:$0xff]  ;;  %v546_v56 = vld [vmem:[%s3097_s2 + $0x58] sm:$0xff] }
  0xbf   : > { %629 = vmatpush.msra.mxu2 %v563_v55  ;;  %592 = vmatpush.msrb.mxu1 %v546_v56 }
  0xc0   : > { %v284_v57 = vpop.f32.mrf.mxu0  ;;  %v296_v58 = vpop.f32.mrf.mxu1 }
  0xc1   : > { %v285_v59 = vadd.f32 %v2046_v40, %v284_v57  ;;  %v297_v60 = vadd.f32 %v2046_v40, %v296_v58  ;;  %v562_v57 = vld [vmem:[%s3097_s2 + $0xd8] sm:$0xff]  ;;  %v545_v58 = vld [vmem:[%s3097_s2 + $0x50] sm:$0xff] }
  0xc2   : > { %630 = vmatpush.msra.mxu2 %v562_v57  ;;  %593 = vmatpush.msrb.mxu1 %v545_v58 }
  0xc3   : > { %v301_v61 = vmax.f32 %v285_v59, 0.0  ;;  %v305_v62 = vmax.f32 %v297_v60, 0.0  ;;  %v561_v59 = vld [vmem:[%s3097_s2 + $0xd0] sm:$0xff]  ;;  %v544_v60 = vld [vmem:[%s3097_s2 + $0x48] sm:$0xff] }
  0xc4   : > { %v320_v3 = vld [vmem:[#allocation2 + $0x1] sm:$0xff]  ;;  %631 = vmatpush.msra.mxu2 %v561_v59  ;;  %594 = vmatpush.msrb.mxu1 %v544_v60 }
  0xc5   : > { %308 = vst.msk [vmem:[#allocation2 + $0x10] sm:$0xff] %vm196_vm0, %v301_v61  ;;  %v2279_v6 = vld [vmem:[#allocation2 + $0x8] sm:$0xff] }
  0xc6   : > { %312 = vst.msk [vmem:[#allocation2 + $0x30] sm:$0xff] %vm196_vm0, %v305_v62  ;;  %v327_v13 = vld [vmem:[#allocation2 + $0x2] sm:$0xff] }
  0xc7   : > { %v2314_v21 = vld [vmem:[#allocation2 + $0x21] sm:$0xff] }
  0xc8   : > { %v287_v0 = vpop.f32.mrf.mxu0  ;;  %v331_v23 = vld [vmem:[#allocation2 + $0x22] sm:$0xff] }
  0xc9   : > { %v288_v1 = vadd.f32 %v2046_v40, %v287_v0  ;;  %v2340_v32 = vld [vmem:[#allocation2 + $0x28] sm:$0xff]  ;;  %v543_v62 = vld [vmem:[%s3097_s2 + $0x40] sm:$0xff]  ;;  %v542_v0 = vld [vmem:[%s3097_s2 + $0x38] sm:$0xff] }
  0xca   : > { %v560_v61 = vld [vmem:[%s3097_s2 + $0xc8] sm:$0xff]  ;;  %595 = vmatpush.msrb.mxu1 %v543_v62 }
  0xcb   : > { %v302_v2 = vmax.f32 %v288_v1, 0.0  ;;  %632 = vmatpush.msra.mxu2 %v560_v61  ;;  %v558_v1 = vld [vmem:[%s3097_s2 + $0xb8] sm:$0xff] }
  0xcc   : > { %v328_v4 = vld [vmem:[#allocation2 + $0xa] sm:$0xff]  ;;  %596 = vmatpush.msrb.mxu1 %v542_v0 }
  0xcd   : > { %309 = vst.msk [vmem:[#allocation2 + $0x18] sm:$0xff] %vm196_vm0, %v302_v2  ;;  %v1761_v5 = vpack.i.bf16 %v320_v3, %v328_v4  ;;  %v2281_v7 = vld [vmem:[#allocation2 + $0x10] sm:$0xff]  ;;  %633 = vmatpush.msra.mxu2 %v559_v63 }
  0xce   : > { %v1766_v14 = vpack.i.bf16 %v327_v13, %v2281_v7  ;;  %v2304_v17 = vld [vmem:[#allocation2 + $0x9] sm:$0xff]  ;;  %v2350_v37 = vld [vmem:[#allocation2 + $0x31] sm:$0xff] }
  0xcf   : > { %1762 = vrot.lane.b32.xlu0 %v1761_v5, %s2115_s14  ;;  %v2338_v31 = vld [vmem:[#allocation2 + $0x29] sm:$0xff]  ;;  %v333_v39 = vld [vmem:[#allocation2 + $0x32] sm:$0xff]  ;;  %v1831_v40 = vpack.i.bf16 %v2340_v32, %v2350_v37  ;;  %v1851_v48 = vpack.i.bf16 %v2350_v37, %v336_v45  ;;  %634 = vmatpush.msra.mxu2 %v558_v1 }
  0xd0   : > { %v332_v33 = vld [vmem:[#allocation2 + $0x2a] sm:$0xff]  ;;  %v1806_v34 = vpack.i.bf16 %v2316_v22, %v2338_v31  ;;  %v1836_v42 = vpack.i.bf16 %v2338_v31, %v333_v39  ;;  %v1856_v51 = vpack.i.bf16 %v333_v39, %v337_v49  ;;  %v554_v13 = vld [vmem:[%s3097_s2 + $0x98] sm:$0xff] }
  0xd1   : > { %v1816_v36 = vpack.i.bf16 %v2314_v21, %v332_v33  ;;  %v2352_v38 = vld [vmem:[#allocation2 + $0x30] sm:$0xff]  ;;  %v1841_v47 = vpack.i.bf16 %v332_v33, %v334_v44  ;;  %v556_v5 = vld [vmem:[%s3097_s2 + $0xa8] sm:$0xff] }
  0xd2   : > { %v1826_v41 = vpack.i.bf16 %v331_v23, %v2352_v38  ;;  %v1846_v46 = vpack.i.bf16 %v2352_v38, %v2362_v43  ;;  %v541_v2 = vld [vmem:[%s3097_s2 + $0x30] sm:$0xff] }
  0xd3   : > { %v557_v3 = vld [vmem:[%s3097_s2 + $0xb0] sm:$0xff]  ;;  %597 = vmatpush.msrb.mxu1 %v541_v2 }
  0xd4   : > { %v329_v8 = vld [vmem:[#allocation2 + $0x12] sm:$0xff]  ;;  %v330_v16 = vld [vmem:[#allocation2 + $0x1a] sm:$0xff]  ;;  %635 = vmatpush.msra.mxu2 %v557_v3 }
  0xd5   : > { %v2284_v9 = vld [vmem:[#allocation2 + $0x18] sm:$0xff]  ;;  %1654 = vmatmul.msk.f32.vlgmr.msra.gmra.mxu3 %vm196_vm0, %v329_v8  ;;  %v1776_v19 = vpack.i.bf16 %v2304_v17, %v329_v8  ;;  %v1796_v25 = vpack.i.bf16 %v329_v8, %v2316_v22  ;;  %v1821_v35 = vpack.i.bf16 %v330_v16, %v2340_v32  ;;  %v539_v8 = vld [vmem:[%s3097_s2 + $0x20] sm:$0xff] }
  0xd6   : > { %v2286_v10 = vld [vmem:[#allocation2 + $0x11] sm:$0xff]  ;;  %v1781_v11 = vpack.i.bf16 %v328_v4, %v2284_v9  ;;  %v2301_v15 = vld [vmem:[#allocation2 + $0x19] sm:$0xff]  ;;  %v1801_v24 = vpack.i.bf16 %v2284_v9, %v2314_v21  ;;  %v540_v4 = vld [vmem:[%s3097_s2 + $0x28] sm:$0xff]  ;;  %636 = vmatpush.msra.mxu2 %v556_v5 }
  0xd7   : > { %v1771_v12 = vpack.i.bf16 %v2279_v6, %v2286_v10  ;;  %1767 = vrot.lane.b32.xlu0 %v1766_v14, %s2116_s20  ;;  %v1786_v18 = vpack.i.bf16 %v2281_v7, %v2301_v15  ;;  %v1791_v20 = vpack.i.bf16 %v2286_v10, %v330_v16  ;;  %v1811_v26 = vpack.i.bf16 %v2301_v15, %v331_v23  ;;  %v537_v14 = vld [vmem:[%s3097_s2 + $0x10] sm:$0xff] }
  0xd8   : > { %1782 = vrot.lane.b32.xlu2 %v1781_v11, %s2116_s20  ;;  %598 = vmatpush.msrb.mxu1 %v540_v4  ;;  %v555_v11 = vld [vmem:[%s3097_s2 + $0xa0] sm:$0xff] }
  0xd9   : > { %1772 = vrot.lane.b32.xlu1 %v1771_v12, %s2117_s22  ;;  %v538_v12 = vld [vmem:[%s3097_s2 + $0x18] sm:$0xff]  ;;  %637 = vmatpush.msra.mxu2 %v555_v11 }
  0xda   : > { %599 = vmatpush.msrb.mxu1 %v539_v8 }
  0xdb   : > { %638 = vmatpush.msra.mxu2 %v554_v13 }
  0xdc   : > { %600 = vmatpush.msrb.mxu1 %v538_v12 }
  0xdd   : > { %1655 = vmatmul.msk.f32.gmra.mxu3 %vm196_vm0, %v330_v16  ;;  %v553_v16 = vld [vmem:[%s3097_s2 + $0x90] sm:$0xff] }
  0xde   : > { %601 = vmatpush.msrb.mxu1 %v537_v14  ;;  %639 = vmatpush.msra.mxu2 %v553_v16 }
  0xdf   : > { %1792 = vrot.lane.b32.xlu0 %v1791_v20, %s2115_s14  ;;  %v535_v20 = vld [vmem:[%s3097_s2] sm:$0xff] }
  0xe0   : > { %1787 = vrot.lane.b32.xlu2 %v1786_v18, %s2117_s22  ;;  %v536_v18 = vld [vmem:[%s3097_s2 + $0x8] sm:$0xff] }
  0xe1   : > { %1777 = vrot.lane.b32.xlu1 %v1776_v19, %s2115_s14  ;;  %v552_v19 = vld [vmem:[%s3097_s2 + $0x88] sm:$0xff]  ;;  %602 = vmatpush.msrb.mxu1 %v536_v18 }
  0xe2   : > { %640 = vmatpush.msra.mxu2 %v552_v19  ;;  %v339_v18 = vld [vmem:[#allocation2 + $0x42] sm:$0xff] }
  0xe3   : > { %603 = vmatpush.msrb.mxu1 %v535_v20 }
  0xe5   : > { %1656 = vmatmul.msk.f32.gmra.mxu3 %vm196_vm0, %v331_v23  ;;  %v551_v23 = vld [vmem:[%s3097_s2 + $0x80] sm:$0xff] }
  0xe6   : > { %641 = vmatpush.msra.mxu2 %v551_v23 }
  0xe7   : > { %1812 = vrot.lane.b32.xlu0 %v1811_v26, %s2115_s14 }
  0xe8   : > { %1802 = vrot.lane.b32.xlu2 %v1801_v24, %s2117_s22 }
  0xe9   : > { %1797 = vrot.lane.b32.xlu1 %v1796_v25, %s2116_s20 }
  0xed   : > { %1657 = vmatmul.msk.f32.gmra.mxu3 %vm196_vm0, %v332_v33 }
  0xef   : > { %1817 = vrot.lane.b32.xlu0 %v1816_v36, %s2115_s14 }
  0xf0   : > { %1807 = vrot.lane.b32.xlu2 %v1806_v34, %s2117_s22 }
  0xf1   : > { %1822 = vrot.lane.b32.xlu1 %v1821_v35, %s2116_s20 }
  0xf5   : > { %1658 = vmatmul.msk.f32.gmra.mxu3 %vm196_vm0, %v333_v39  ;;  %v313_v39 = vld [vmem:[#allocation2] sm:$0xff] }
  0xf7   : > { %1837 = vrot.lane.b32.xlu0 %v1836_v42, %s2115_s14 }
  0xf8   : > { %1832 = vrot.lane.b32.xlu2 %v1831_v40, %s2117_s22 }
  0xf9   : > { %1827 = vrot.lane.b32.xlu1 %v1826_v41, %s2116_s20 }
  0xfd   : > { %1659 = vmatmul.msk.f32.gmra.mxu3 %vm196_vm0, %v336_v45 }
  0xff   : > { %1852 = vrot.lane.b32.xlu0 %v1851_v48, %s2115_s14 }
 0x100   : > { %1847 = vrot.lane.b32.xlu2 %v1846_v46, %s2117_s22 }
 0x101   : > { %1842 = vrot.lane.b32.xlu1 %v1841_v47, %s2116_s20 }
 0x105   : > { %1660 = vmatmul.msk.f32.gmra.mxu3 %vm196_vm0, %v339_v18 }
 0x107   : > { %415 = vrot.lane.b32.xlu0 %v334_v44, %s2117_s22 }
 0x108   : > { %482 = vrot.lane.b32.xlu2 %v338_v50, %s2117_s22 }
 0x109   : > { %1857 = vrot.lane.b32.xlu1 %v1856_v51, %s2116_s20 }
 0x132   : > { %v1783_v24 = vpop.permute.xlu2 %1782 }
 0x133   : > { %v1785_v52 = vunpack.i.h.bf16 %v1783_v24  ;;  %v1784_v53 = vunpack.i.l.bf16 %v1783_v24 }
 0x13a   : > { %v1788_v26 = vpop.permute.xlu2 %1787 }
 0x13b   : > { %v1790_v54 = vunpack.i.h.bf16 %v1788_v26  ;;  %v1789_v55 = vunpack.i.l.bf16 %v1788_v26 }
 0x141   : > { %v1763_v25 = vpop.permute.xlu0 %1762 }
 0x142   : > { %v1765_v27 = vunpack.i.h.bf16 %v1763_v25  ;;  %v1764_v28 = vunpack.i.l.bf16 %v1763_v25  ;;  %v1803_v48 = vpop.permute.xlu2 %1802 }
 0x143   : > { %v1804_v3 = vunpack.i.l.bf16 %v1803_v48 }
 0x144   : > { %v491_v40 = vsel %vm196_vm0, %v313_v39, %v1765_v27  ;;  %v514_v41 = vsel %vm196_vm0, %v2304_v17, %v1764_v28 }
 0x149   : > { %v1768_v34 = vpop.permute.xlu0 %1767 }
 0x14a   : > { %v1770_v35 = vunpack.i.h.bf16 %v1768_v34  ;;  %v1769_v36 = vunpack.i.l.bf16 %v1768_v34  ;;  %v1808_v5 = vpop.permute.xlu2 %1807 }
 0x14b   : > { %v1773_v29 = vpop.permute.xlu1 %1772  ;;  %v1810_v23 = vunpack.i.h.bf16 %v1808_v5  ;;  %v1809_v24 = vunpack.i.l.bf16 %v1808_v5 }
 0x14c   : > { %v1775_v30 = vunpack.i.h.bf16 %v1773_v29  ;;  %v1774_v33 = vunpack.i.l.bf16 %v1773_v29  ;;  %v499_v42 = vsel %vm498_vm1, %v491_v40, %v1770_v35  ;;  %v521_v44 = vsel %vm498_vm1, %v514_v41, %v1769_v36 }
 0x14e   : > { %v507_v45 = vsel %vm506_vm2, %v499_v42, %v1775_v30  ;;  %v528_v46 = vsel %vm506_vm2, %v521_v44, %v1774_v33 }
 0x14f   : > { %604 = vmatmul.f32.vlgmr.msrb.gmra.mxu1 %v507_v45  ;;  %642 = vmatmul.f32.vlgmr.msra.gmra.mxu2 %v528_v46 }
 0x151   : > { %v1793_v51 = vpop.permute.xlu0 %1792 }
 0x152   : > { %v1795_v61 = vunpack.i.h.bf16 %v1793_v51  ;;  %v1794_v62 = vunpack.i.l.bf16 %v1793_v51  ;;  %v1833_v33 = vpop.permute.xlu2 %1832 }
 0x153   : > { %v1778_v47 = vpop.permute.xlu1 %1777  ;;  %v1835_v41 = vunpack.i.h.bf16 %v1833_v33  ;;  %v1834_v42 = vunpack.i.l.bf16 %v1833_v33 }
 0x154   : > { %v1780_v49 = vunpack.i.h.bf16 %v1778_v47  ;;  %v1779_v50 = vunpack.i.l.bf16 %v1778_v47  ;;  %v516_v4 = vsel %vm196_vm0, %v2301_v15, %v1794_v62 }
 0x156   : > { %v492_v17 = vsel %vm196_vm0, %v2279_v6, %v1780_v49  ;;  %v515_v56 = vsel %vm196_vm0, %v2286_v10, %v1779_v50  ;;  %v1805_v6 = vunpack.i.h.bf16 %v1803_v48  ;;  %v493_v10 = vsel %vm196_vm0, %v2281_v7, %v1795_v61 }
 0x157   : > { %v500_v57 = vsel %vm498_vm1, %v492_v17, %v1785_v52  ;;  %v522_v58 = vsel %vm498_vm1, %v515_v56, %v1784_v53 }
 0x158   : > { %v508_v59 = vsel %vm506_vm2, %v500_v57, %v1790_v54  ;;  %v529_v60 = vsel %vm506_vm2, %v522_v58, %v1789_v55 }
 0x159   : > { %607 = vmatmul.f32.gmra.mxu1 %v508_v59  ;;  %645 = vmatmul.f32.gmra.mxu2 %v529_v60  ;;  %v1813_v2 = vpop.permute.xlu0 %1812 }
 0x15a   : > { %v1815_v14 = vunpack.i.h.bf16 %v1813_v2  ;;  %v1814_v16 = vunpack.i.l.bf16 %v1813_v2  ;;  %v1848_v51 = vpop.permute.xlu2 %1847 }
 0x15b   : > { %v1798_v63 = vpop.permute.xlu1 %1797  ;;  %v1850_v55 = vunpack.i.h.bf16 %v1848_v51  ;;  %v1849_v17 = vunpack.i.l.bf16 %v1848_v51 }
 0x15c   : > { %v1800_v0 = vunpack.i.h.bf16 %v1798_v63  ;;  %v1799_v1 = vunpack.i.l.bf16 %v1798_v63  ;;  %v494_v25 = vsel %vm196_vm0, %v2284_v9, %v1815_v14  ;;  %v517_v26 = vsel %vm196_vm0, %v2314_v21, %v1814_v16  ;;  %v971_v16 = vld [vmem:[%s3097_s2 + $0x238] sm:$0xff] }
 0x15d   : > { %1077 = vmatpush.msra.mxu1 %v971_v16 }
 0x15e   : > { %v501_v8 = vsel %vm498_vm1, %v493_v10, %v1800_v0  ;;  %v523_v11 = vsel %vm498_vm1, %v516_v4, %v1799_v1 }
 0x15f   : > { %v509_v12 = vsel %vm506_vm2, %v501_v8, %v1805_v6  ;;  %v530_v13 = vsel %vm506_vm2, %v523_v11, %v1804_v3  ;;  %v681_v8 = vpop.f32.mrf.mxu3 }
 0x161   : > { %610 = vmatmul.f32.gmra.mxu1 %v509_v12  ;;  %648 = vmatmul.f32.gmra.mxu2 %v530_v13  ;;  %v1818_v15 = vpop.permute.xlu0 %1817  ;;  %v2517_v12 = vld [vmem:[%s3098_s3 + $0x1] ss:$0 sm:$0xff] }
 0x162   : > { %v1820_v34 = vunpack.i.h.bf16 %v1818_v15  ;;  %v1819_v35 = vunpack.i.l.bf16 %v1818_v15  ;;  %v483_v2 = vpop.permute.xlu2 %482  ;;  %v969_v15 = vld [vmem:[%s3097_s2 + $0x228] sm:$0xff] }
 0x163   : > { %v1823_v7 = vpop.permute.xlu1 %1822 }
 0x164   : > { %v1825_v19 = vunpack.i.h.bf16 %v1823_v7  ;;  %v1824_v20 = vunpack.i.l.bf16 %v1823_v7  ;;  %v495_v21 = vsel %vm196_vm0, %v2316_v22, %v1820_v34  ;;  %v518_v44 = vsel %vm196_vm0, %v2338_v31, %v1819_v35 }
 0x166   : > { %v502_v27 = vsel %vm498_vm1, %v494_v25, %v1825_v19  ;;  %v524_v28 = vsel %vm498_vm1, %v517_v26, %v1824_v20  ;;  %v970_v19 = vld [vmem:[%s3097_s2 + $0x230] sm:$0xff] }
 0x167   : > { %v510_v29 = vsel %vm506_vm2, %v502_v27, %v1810_v23  ;;  %v531_v30 = vsel %vm506_vm2, %v524_v28, %v1809_v24  ;;  %1078 = vmatpush.msra.mxu1 %v970_v19  ;;  %v968_v24 = vld [vmem:[%s3097_s2 + $0x220] sm:$0xff] }
 0x169   : > { %613 = vmatmul.f32.gmra.mxu1 %v510_v29  ;;  %651 = vmatmul.f32.gmra.mxu2 %v531_v30  ;;  %v1838_v9 = vpop.permute.xlu0 %1837 }
 0x16a   : > { %v1840_v49 = vunpack.i.h.bf16 %v1838_v9  ;;  %v1839_v50 = vunpack.i.l.bf16 %v1838_v9  ;;  %1079 = vmatpush.msra.mxu1 %v969_v15 }
 0x16b   : > { %v1828_v36 = vpop.permute.xlu1 %1827 }
 0x16c   : > { %v1830_v39 = vunpack.i.h.bf16 %v1828_v36  ;;  %v1829_v40 = vunpack.i.l.bf16 %v1828_v36  ;;  %v496_v31 = vsel %vm196_vm0, %v2340_v32, %v1840_v49  ;;  %v519_v56 = vsel %vm196_vm0, %v2350_v37, %v1839_v50  ;;  %1080 = vmatpush.msra.mxu1 %v968_v24 }
 0x16e   : > { %v503_v45 = vsel %vm498_vm1, %v495_v21, %v1830_v39  ;;  %v525_v46 = vsel %vm498_vm1, %v518_v44, %v1829_v40 }
 0x16f   : > { %v511_v47 = vsel %vm506_vm2, %v503_v45, %v1835_v41  ;;  %v532_v48 = vsel %vm506_vm2, %v525_v46, %v1834_v42 }
 0x171   : > { %616 = vmatmul.f32.gmra.mxu1 %v511_v47  ;;  %654 = vmatmul.f32.gmra.mxu2 %v532_v48  ;;  %v1853_v22 = vpop.permute.xlu0 %1852 }
 0x172   : > { %v1855_v61 = vunpack.i.h.bf16 %v1853_v22  ;;  %v1854_v62 = vunpack.i.l.bf16 %v1853_v22 }
 0x173   : > { %v1843_v52 = vpop.permute.xlu1 %1842 }
 0x174   : > { %v1845_v53 = vunpack.i.h.bf16 %v1843_v52  ;;  %v1844_v54 = vunpack.i.l.bf16 %v1843_v52  ;;  %v497_v37 = vsel %vm196_vm0, %v2352_v38, %v1855_v61  ;;  %v520_v6 = vsel %vm196_vm0, %v2362_v43, %v1854_v62  ;;  %v684_v43 = vpop.f32.mrf.mxu3 }
 0x176   : > { %v504_v57 = vsel %vm498_vm1, %v496_v31, %v1845_v53  ;;  %v526_v58 = vsel %vm498_vm1, %v519_v56, %v1844_v54 }
 0x177   : > { %v512_v59 = vsel %vm506_vm2, %v504_v57, %v1850_v55  ;;  %v533_v60 = vsel %vm506_vm2, %v526_v58, %v1849_v17 }
 0x179   : > { %619 = vmatmul.f32.gmra.mxu1 %v512_v59  ;;  %657 = vmatmul.f32.gmra.mxu2 %v533_v60  ;;  %v416_v32 = vpop.permute.xlu0 %415 }
 0x17b   : > { %v1858_v63 = vpop.permute.xlu1 %1857 }
 0x17c   : > { %v1860_v0 = vunpack.i.h.bf16 %v1858_v63  ;;  %v1859_v1 = vunpack.i.l.bf16 %v1858_v63  ;;  %v687_v27 = vpop.f32.mrf.mxu3 }
 0x17e   : > { %v505_v3 = vsel %vm498_vm1, %v497_v37, %v1860_v0  ;;  %v527_v10 = vsel %vm498_vm1, %v520_v6, %v1859_v1 }
 0x17f   : > { %v513_v4 = vsel %vm506_vm2, %v505_v3, %v416_v32  ;;  %v534_v5 = vsel %vm506_vm2, %v527_v10, %v483_v2 }
 0x181   : > { %622 = vmatmul.f32.gmra.mxu1 %v513_v4  ;;  %660 = vmatmul.f32.gmra.mxu2 %v534_v5 }
 0x184   : > { %v690_v40 = vpop.f32.mrf.mxu3 }
 0x18c   : > { %v693_v50 = vpop.f32.mrf.mxu3 }
 0x194   : > { %v696_v0 = vpop.f32.mrf.mxu3 }
 0x1cc   : > { %v605_v11 = vpop.f32.mrf.mxu1 }
 0x1cd   : > { %v606_v38 = vadd.f32 %v2517_v12, %v605_v11 }
 0x1d2   : > { %v643_v13 = vpop.f32.mrf.mxu2 }
 0x1d3   : > { %v644_v14 = vadd.f32 %v643_v13, %v606_v38 }
 0x1d5   : > { %v682_v7 = vadd.f32 %v681_v8, %v644_v14 }
 0x1d6   : > { %v608_v18 = vpop.f32.mrf.mxu1 }
 0x1d7   : > { %v702_v20 = vmax.f32 %v682_v7, 0.0  ;;  %v609_v23 = vadd.f32 %v2517_v12, %v608_v18  ;;  %v699_v18 = vpop.f32.mrf.mxu3 }
 0x1d9   : > { %709 = vst.msk [vmem:[#allocation3] sm:$0xff] %vm196_vm0, %v702_v20 }
 0x1dc   : > { %v646_v25 = vpop.f32.mrf.mxu2 }
 0x1dd   : > { %v647_v26 = vadd.f32 %v646_v25, %v609_v23 }
 0x1de   : > { %v611_v28 = vpop.f32.mrf.mxu1 }
 0x1df   : > { %v685_v29 = vadd.f32 %v684_v43, %v647_v26  ;;  %v612_v33 = vadd.f32 %v2517_v12, %v611_v28  ;;  %v950_v28 = vld [vmem:[%s3097_s2 + $0x190] sm:$0xff] }
 0x1e1   : > { %v703_v30 = vmax.f32 %v685_v29, 0.0  ;;  %v949_v29 = vld [vmem:[%s3097_s2 + $0x188] sm:$0xff] }
 0x1e3   : > { %710 = vst.msk [vmem:[#allocation3 + $0x8] sm:$0xff] %vm196_vm0, %v703_v30 }
 0x1e4   : > { %v649_v34 = vpop.f32.mrf.mxu2 }
 0x1e5   : > { %v650_v35 = vadd.f32 %v649_v34, %v612_v33 }
 0x1e6   : > { %v614_v36 = vpop.f32.mrf.mxu1 }
 0x1e7   : > { %v688_v39 = vadd.f32 %v687_v27, %v650_v35  ;;  %v615_v41 = vadd.f32 %v2517_v12, %v614_v36  ;;  %v951_v27 = vld [vmem:[%s3097_s2 + $0x198] sm:$0xff] }
 0x1e8   : > { %989 = vmatpush.msrb.mxu3 %v951_v27 }
 0x1e9   : > { %v704_v9 = vmax.f32 %v688_v39, 0.0 }
 0x1ea   : > { %v2538_v47 = vld [vmem:[#allocation3 + $0x8] sm:$0xff]  ;;  %990 = vmatpush.msrb.mxu3 %v950_v28 }
 0x1eb   : > { %711 = vst.msk [vmem:[#allocation3 + $0x10] sm:$0xff] %vm196_vm0, %v704_v9  ;;  %v730_v48 = vld [vmem:[#allocation3 + $0x2] sm:$0xff]  ;;  %v947_v9 = vld [vmem:[%s3097_s2 + $0x178] sm:$0xff] }
 0x1ec   : > { %v652_v42 = vpop.f32.mrf.mxu2  ;;  %v723_v49 = vld [vmem:[#allocation3 + $0x1] sm:$0xff]  ;;  %991 = vmatpush.msrb.mxu3 %v949_v29 }
 0x1ed   : > { %v653_v21 = vadd.f32 %v652_v42, %v615_v41  ;;  %v946_v41 = vld [vmem:[%s3097_s2 + $0x170] sm:$0xff] }
 0x1ee   : > { %v617_v44 = vpop.f32.mrf.mxu1 }
 0x1ef   : > { %v691_v45 = vadd.f32 %v690_v40, %v653_v21  ;;  %v618_v54 = vadd.f32 %v2517_v12, %v617_v44  ;;  %v948_v40 = vld [vmem:[%s3097_s2 + $0x180] sm:$0xff]  ;;  %v945_v44 = vld [vmem:[%s3097_s2 + $0x168] sm:$0xff] }
 0x1f0   : > { %992 = vmatpush.msrb.mxu3 %v948_v40 }
 0x1f1   : > { %v705_v46 = vmax.f32 %v691_v45, 0.0 }
 0x1f2   : > { %v2540_v51 = vld [vmem:[#allocation3 + $0x10] sm:$0xff]  ;;  %993 = vmatpush.msrb.mxu3 %v947_v9 }
 0x1f3   : > { %v731_v52 = vld [vmem:[#allocation3 + $0xa] sm:$0xff]  ;;  %712 = vst.msk [vmem:[#allocation3 + $0x18] sm:$0xff] %vm196_vm0, %v705_v46  ;;  %v1871_v22 = vpack.i.bf16 %v2540_v51, %v2538_v47  ;;  %v944_v46 = vld [vmem:[%s3097_s2 + $0x160] sm:$0xff] }
 0x1f4   : > { %v2542_v53 = vld [vmem:[#allocation3 + $0x9] sm:$0xff]  ;;  %v1866_v55 = vpack.i.bf16 %v731_v52, %v730_v48  ;;  %v655_v31 = vpop.f32.mrf.mxu2  ;;  %994 = vmatpush.msrb.mxu3 %v946_v41 }
 0x1f5   : > { %v1861_v17 = vpack.i.bf16 %v2542_v53, %v723_v49  ;;  %v656_v56 = vadd.f32 %v655_v31, %v618_v54  ;;  %1872 = vrot.lane.b32.xlu0 %v1871_v22, %s2117_s22  ;;  %v737_v49 = vld [vmem:[#allocation3 + $0x38] sm:$0xff]  ;;  %v741_v22 = vld [vmem:[#allocation3 + $0x41] sm:$0xff]  ;;  %v942_v31 = vld [vmem:[%s3097_s2 + $0x150] sm:$0xff] }
 0x1f6   : > { %1867 = vrot.lane.b32.xlu2 %v1866_v55, %s2116_s20  ;;  %v620_v57 = vpop.f32.mrf.mxu1  ;;  %995 = vmatpush.msrb.mxu3 %v945_v44  ;;  %v739_v54 = vld [vmem:[#allocation3 + $0x3a] sm:$0xff] }
 0x1f7   : > { %1862 = vrot.lane.b32.xlu1 %v1861_v17, %s2115_s14  ;;  %v694_v58 = vadd.f32 %v693_v50, %v656_v56  ;;  %v621_v60 = vadd.f32 %v2517_v12, %v620_v57  ;;  %v2638_v50 = vld [vmem:[#allocation3 + $0x39] sm:$0xff]  ;;  %v966_v57 = vld [vmem:[%s3097_s2 + $0x210] sm:$0xff] }
 0x1f8   : > { %996 = vmatpush.msrb.mxu3 %v944_v46  ;;  %v740_v55 = vld [vmem:[#allocation3 + $0x40] sm:$0xff]  ;;  %v943_v17 = vld [vmem:[%s3097_s2 + $0x158] sm:$0xff] }
 0x1f9   : > { %v706_v59 = vmax.f32 %v694_v58, 0.0  ;;  %v967_v56 = vld [vmem:[%s3097_s2 + $0x218] sm:$0xff]  ;;  %v941_v58 = vld [vmem:[%s3097_s2 + $0x148] sm:$0xff] }
 0x1fa   : > { %v732_v61 = vld [vmem:[#allocation3 + $0x12] sm:$0xff]  ;;  %997 = vmatpush.msrb.mxu3 %v943_v17  ;;  %1027 = vmatpush.msrb.mxu0 %v967_v56 }
 0x1fb   : > { %v2553_v62 = vld [vmem:[#allocation3 + $0x18] sm:$0xff]  ;;  %713 = vst.msk [vmem:[#allocation3 + $0x20] sm:$0xff] %vm196_vm0, %v706_v59  ;;  %1661 = vmatmul.msk.f32.vlgmr.msra.gmra.mxu1 %vm196_vm0, %v732_v61  ;;  %v1881_v2 = vpack.i.bf16 %v732_v61, %v2540_v51  ;;  %v965_v59 = vld [vmem:[%s3097_s2 + $0x208] sm:$0xff] }
 0x1fc   : > { %v2555_v63 = vld [vmem:[#allocation3 + $0x11] sm:$0xff]  ;;  %v658_v37 = vpop.f32.mrf.mxu2  ;;  %998 = vmatpush.msrb.mxu3 %v942_v31  ;;  %1028 = vmatpush.msrb.mxu0 %v966_v57 }
 0x1fd   : > { %v1886_v1 = vpack.i.bf16 %v2553_v62, %v2555_v63  ;;  %v1876_v32 = vpack.i.bf16 %v2555_v63, %v731_v52  ;;  %v659_v6 = vadd.f32 %v658_v37, %v621_v60  ;;  %v1946_v52 = vpack.i.bf16 %v2638_v50, %v737_v49  ;;  %v964_v60 = vld [vmem:[%s3097_s2 + $0x200] sm:$0xff]  ;;  %v938_v37 = vld [vmem:[%s3097_s2 + $0x130] sm:$0xff] }
 0x1fe   : > { %1882 = vrot.lane.b32.xlu2 %v1881_v2, %s2116_s20  ;;  %v623_v3 = vpop.f32.mrf.mxu1  ;;  %999 = vmatpush.msrb.mxu3 %v941_v58  ;;  %v962_v2 = vld [vmem:[%s3097_s2 + $0x1f0] sm:$0xff] }
 0x1ff   : > { %1887 = vrot.lane.b32.xlu0 %v1886_v1, %s2117_s22  ;;  %1877 = vrot.lane.b32.xlu1 %v1876_v32, %s2115_s14  ;;  %v697_v10 = vadd.f32 %v696_v0, %v659_v6  ;;  %v624_v5 = vadd.f32 %v2517_v12, %v623_v3  ;;  %v963_v0 = vld [vmem:[%s3097_s2 + $0x1f8] sm:$0xff]  ;;  %v961_v32 = vld [vmem:[%s3097_s2 + $0x1e8] sm:$0xff] }
 0x200   : > { %1029 = vmatpush.msrb.mxu0 %v965_v59  ;;  %v939_v1 = vld [vmem:[%s3097_s2 + $0x138] sm:$0xff]  ;;  %v960_v6 = vld [vmem:[%s3097_s2 + $0x1e0] sm:$0xff]  ;;  %v937_v3 = vld [vmem:[%s3097_s2 + $0x128] sm:$0xff] }
 0x201   : > { %v707_v4 = vmax.f32 %v697_v10, 0.0  ;;  %v959_v10 = vld [vmem:[%s3097_s2 + $0x1d8] sm:$0xff] }
 0x202   : > { %v733_v8 = vld [vmem:[#allocation3 + $0x1a] sm:$0xff]  ;;  %1030 = vmatpush.msrb.mxu0 %v964_v60 }
 0x203   : > { %v2567_v11 = vld [vmem:[#allocation3 + $0x20] sm:$0xff]  ;;  %714 = vst.msk [vmem:[#allocation3 + $0x28] sm:$0xff] %vm196_vm0, %v707_v4  ;;  %1662 = vmatmul.msk.f32.gmra.mxu1 %vm196_vm0, %v733_v8  ;;  %v1896_v13 = vpack.i.bf16 %v733_v8, %v2553_v62  ;;  %v958_v4 = vld [vmem:[%s3097_s2 + $0x1d0] sm:$0xff] }
 0x204   : > { %v2569_v38 = vld [vmem:[#allocation3 + $0x19] sm:$0xff]  ;;  %v661_v16 = vpop.f32.mrf.mxu2  ;;  %1031 = vmatpush.msrb.mxu0 %v963_v0 }
 0x205   : > { %v1901_v43 = vpack.i.bf16 %v2567_v11, %v2569_v38  ;;  %v1891_v14 = vpack.i.bf16 %v2569_v38, %v732_v61  ;;  %v662_v7 = vadd.f32 %v661_v16, %v624_v5  ;;  %v940_v61 = vld [vmem:[%s3097_s2 + $0x140] sm:$0xff]  ;;  %v957_v5 = vld [vmem:[%s3097_s2 + $0x1c8] sm:$0xff] }
 0x206   : > { %1897 = vrot.lane.b32.xlu2 %v1896_v13, %s2116_s20  ;;  %1000 = vmatpush.msrb.mxu3 %v940_v61  ;;  %v955_v13 = vld [vmem:[%s3097_s2 + $0x1b8] sm:$0xff]  ;;  %v953_v16 = vld [vmem:[%s3097_s2 + $0x1a8] sm:$0xff] }
 0x207   : > { %1902 = vrot.lane.b32.xlu0 %v1901_v43, %s2117_s22  ;;  %1892 = vrot.lane.b32.xlu1 %v1891_v14, %s2115_s14  ;;  %v700_v12 = vadd.f32 %v699_v18, %v662_v7  ;;  %v956_v43 = vld [vmem:[%s3097_s2 + $0x1c0] sm:$0xff]  ;;  %v954_v14 = vld [vmem:[%s3097_s2 + $0x1b0] sm:$0xff] }
 0x208   : > { %1001 = vmatpush.msrb.mxu3 %v939_v1  ;;  %1032 = vmatpush.msrb.mxu0 %v962_v2  ;;  %v952_v18 = vld [vmem:[%s3097_s2 + $0x1a0] sm:$0xff] }
 0x209   : > { %v708_v19 = vmax.f32 %v700_v12, 0.0 }
 0x20a   : > { %v734_v20 = vld [vmem:[#allocation3 + $0x22] sm:$0xff]  ;;  %1033 = vmatpush.msrb.mxu0 %v961_v32  ;;  %1002 = vmatpush.msrb.mxu3 %v938_v37 }
 0x20b   : > { %v2580_v15 = vld [vmem:[#allocation3 + $0x28] sm:$0xff]  ;;  %715 = vst.msk [vmem:[#allocation3 + $0x30] sm:$0xff] %vm196_vm0, %v708_v19  ;;  %1663 = vmatmul.msk.f32.gmra.mxu1 %vm196_vm0, %v734_v20  ;;  %v1911_v25 = vpack.i.bf16 %v734_v20, %v2567_v11 }
 0x20c   : > { %v2582_v23 = vld [vmem:[#allocation3 + $0x21] sm:$0xff]  ;;  %1034 = vmatpush.msrb.mxu0 %v960_v6  ;;  %1003 = vmatpush.msrb.mxu3 %v937_v3 }
 0x20d   : > { %v1916_v24 = vpack.i.bf16 %v2580_v15, %v2582_v23  ;;  %v1906_v26 = vpack.i.bf16 %v2582_v23, %v733_v8  ;;  %v936_v8 = vld [vmem:[%s3097_s2 + $0x120] sm:$0xff] }
 0x20e   : > { %1912 = vrot.lane.b32.xlu2 %v1911_v25, %s2116_s20  ;;  %1035 = vmatpush.msrb.mxu0 %v959_v10 }
 0x20f   : > { %1917 = vrot.lane.b32.xlu0 %v1916_v24, %s2117_s22  ;;  %1907 = vrot.lane.b32.xlu1 %v1906_v26, %s2115_s14  ;;  %v716_v26 = vld [vmem:[#allocation3] sm:$0xff] }
 0x210   : > { %1036 = vmatpush.msrb.mxu0 %v958_v4  ;;  %1004 = vmatpush.msrb.mxu3 %v936_v8 }
 0x212   : > { %v735_v30 = vld [vmem:[#allocation3 + $0x2a] sm:$0xff]  ;;  %v736_v42 = vld [vmem:[#allocation3 + $0x32] sm:$0xff]  ;;  %1037 = vmatpush.msrb.mxu0 %v957_v5 }
 0x213   : > { %v2602_v33 = vld [vmem:[#allocation3 + $0x30] sm:$0xff]  ;;  %1664 = vmatmul.msk.f32.gmra.mxu1 %vm196_vm0, %v735_v30  ;;  %v1926_v36 = vpack.i.bf16 %v735_v30, %v2580_v15 }
 0x214   : > { %v2604_v34 = vld [vmem:[#allocation3 + $0x29] sm:$0xff]  ;;  %v2623_v21 = vld [vmem:[#allocation3 + $0x31] sm:$0xff]  ;;  %v1941_v45 = vpack.i.bf16 %v736_v42, %v2602_v33  ;;  %1038 = vmatpush.msrb.mxu0 %v956_v43 }
 0x215   : > { %v1931_v35 = vpack.i.bf16 %v2602_v33, %v2604_v34  ;;  %v1921_v39 = vpack.i.bf16 %v2604_v34, %v734_v20  ;;  %v1936_v48 = vpack.i.bf16 %v2623_v21, %v735_v30 }
 0x216   : > { %1927 = vrot.lane.b32.xlu2 %v1926_v36, %s2116_s20  ;;  %1039 = vmatpush.msrb.mxu0 %v955_v13 }
 0x217   : > { %1932 = vrot.lane.b32.xlu0 %v1931_v35, %s2117_s22  ;;  %1922 = vrot.lane.b32.xlu1 %v1921_v39, %s2115_s14 }
 0x218   : > { %1040 = vmatpush.msrb.mxu0 %v954_v14 }
 0x21a   : > { %1041 = vmatpush.msrb.mxu0 %v953_v16 }
 0x21b   : > { %1665 = vmatmul.msk.f32.gmra.mxu1 %vm196_vm0, %v736_v42 }
 0x21c   : > { %1042 = vmatpush.msrb.mxu0 %v952_v18 }
 0x21e   : > { %1942 = vrot.lane.b32.xlu2 %v1941_v45, %s2116_s20 }
 0x21f   : > { %881 = vrot.lane.b32.xlu0 %v2623_v21, %s2117_s22  ;;  %1937 = vrot.lane.b32.xlu1 %v1936_v48, %s2115_s14 }
 0x223   : > { %1666 = vmatmul.msk.f32.gmra.mxu1 %vm196_vm0, %v739_v54 }
 0x226   : > { %860 = vrot.lane.b32.xlu2 %v737_v49, %s2116_s20 }
 0x227   : > { %1947 = vrot.lane.b32.xlu0 %v1946_v52, %s2117_s22  ;;  %838 = vrot.lane.b32.xlu1 %v736_v42, %s2115_s14 }
 0x22e   : > { %862 = vrot.lane.b32.xlu2 %v740_v55, %s2116_s20 }
 0x22f   : > { %885 = vrot.lane.b32.xlu0 %v741_v22, %s2117_s22  ;;  %840 = vrot.lane.b32.xlu1 %v739_v54, %s2115_s14 }
 0x250   : > { %v1868_v7 = vpop.permute.xlu2 %1867 }
 0x251   : > { %v1869_v25 = vunpack.i.l.bf16 %v1868_v7  ;;  %v1870_v40 = vunpack.i.h.bf16 %v1868_v7 }
 0x258   : > { %v1883_v12 = vpop.permute.xlu2 %1882 }
 0x259   : > { %v1884_v44 = vunpack.i.l.bf16 %v1883_v12  ;;  %v1885_v31 = vunpack.i.h.bf16 %v1883_v12 }
 0x260   : > { %v1898_v41 = vpop.permute.xlu2 %1897 }
 0x261   : > { %v1899_v58 = vunpack.i.l.bf16 %v1898_v41  ;;  %v1900_v3 = vunpack.i.h.bf16 %v1898_v41 }
 0x267   : > { %v1873_v19 = vpop.permute.xlu0 %1872 }
 0x268   : > { %v1874_v27 = vunpack.i.l.bf16 %v1873_v19  ;;  %v1875_v46 = vunpack.i.h.bf16 %v1873_v19  ;;  %v1913_v60 = vpop.permute.xlu2 %1912 }
 0x269   : > { %v1863_v20 = vpop.permute.xlu1 %1862  ;;  %v1914_v5 = vunpack.i.l.bf16 %v1913_v60 }
 0x26a   : > { %v1864_v24 = vunpack.i.l.bf16 %v1863_v20  ;;  %v1865_v28 = vunpack.i.h.bf16 %v1863_v20 }
 0x26c   : > { %v894_v29 = vsel %vm196_vm0, %v716_v26, %v1864_v24  ;;  %v895_v39 = vsel %vm196_vm0, %v2538_v47, %v1865_v28  ;;  %v1915_v24 = vunpack.i.h.bf16 %v1913_v60 }
 0x26d   : > { %v901_v30 = vsel %vm498_vm1, %v894_v29, %v1869_v25  ;;  %v902_v45 = vsel %vm498_vm1, %v895_v39, %v1870_v40 }
 0x26e   : > { %v908_v35 = vsel %vm506_vm2, %v901_v30, %v1874_v27  ;;  %v909_v22 = vsel %vm506_vm2, %v902_v45, %v1875_v46 }
 0x26f   : > { %1005 = vmatmul.f32.vlgmr.msrb.gmra.mxu3 %v908_v35 }
 0x270   : > { %v1928_v18 = vpop.permute.xlu2 %1927 }
 0x271   : > { %v1888_v36 = vpop.permute.xlu0 %1887  ;;  %v1878_v9 = vpop.permute.xlu1 %1877 }
 0x272   : > { %v1879_v42 = vunpack.i.l.bf16 %v1878_v9  ;;  %v1889_v48 = vunpack.i.l.bf16 %v1888_v36  ;;  %v1880_v49 = vunpack.i.h.bf16 %v1878_v9 }
 0x274   : > { %v915_v52 = vsel %vm196_vm0, %v2542_v53, %v1879_v42  ;;  %v896_v17 = vsel %vm196_vm0, %v2540_v51, %v1880_v49  ;;  %v1890_v53 = vunpack.i.h.bf16 %v1888_v36  ;;  %v1930_v42 = vunpack.i.h.bf16 %v1928_v18 }
 0x275   : > { %v922_v54 = vsel %vm498_vm1, %v915_v52, %v1884_v44  ;;  %v903_v59 = vsel %vm498_vm1, %v896_v17, %v1885_v31 }
 0x276   : > { %v929_v55 = vsel %vm506_vm2, %v922_v54, %v1889_v48  ;;  %v910_v32 = vsel %vm506_vm2, %v903_v59, %v1890_v53 }
 0x277   : > { %1008 = vmatmul.f32.gmra.mxu3 %v909_v22  ;;  %1043 = vmatmul.f32.vlgmr.msrb.gmra.mxu0 %v929_v55 }
 0x278   : > { %v1943_v40 = vpop.permute.xlu2 %1942 }
 0x279   : > { %v1903_v47 = vpop.permute.xlu0 %1902  ;;  %v1893_v56 = vpop.permute.xlu1 %1892  ;;  %v1944_v46 = vunpack.i.l.bf16 %v1943_v40 }
 0x27a   : > { %v1894_v57 = vunpack.i.l.bf16 %v1893_v56  ;;  %v1904_v61 = vunpack.i.l.bf16 %v1903_v47  ;;  %v1895_v0 = vunpack.i.h.bf16 %v1893_v56  ;;  %v1905_v43 = vunpack.i.h.bf16 %v1903_v47 }
 0x27c   : > { %v916_v1 = vsel %vm196_vm0, %v2555_v63, %v1894_v57  ;;  %v897_v6 = vsel %vm196_vm0, %v2553_v62, %v1895_v0  ;;  %v742_v62 = vld [vmem:[#allocation3 + $0x42] sm:$0xff] }
 0x27d   : > { %v923_v2 = vsel %vm498_vm1, %v916_v1, %v1899_v58  ;;  %v904_v8 = vsel %vm498_vm1, %v897_v6, %v1900_v3  ;;  %1667 = vmatmul.msk.f32.gmra.mxu1 %vm196_vm0, %v742_v62  ;;  %v1945_v58 = vunpack.i.h.bf16 %v1943_v40 }
 0x27e   : > { %v930_v37 = vsel %vm506_vm2, %v923_v2, %v1904_v61  ;;  %v911_v7 = vsel %vm506_vm2, %v904_v8, %v1905_v43  ;;  %v2791_v8 = vld [vmem:[%s3097_s2 + $0x350] sm:$0xff] }
 0x27f   : > { %1011 = vmatmul.f32.gmra.mxu3 %v910_v32  ;;  %1046 = vmatmul.f32.gmra.mxu0 %v930_v37  ;;  %v1082_v37 = vpop.f32.mrf.mxu1 }
 0x280   : > { %v861_v47 = vpop.permute.xlu2 %860 }
 0x281   : > { %v1918_v51 = vpop.permute.xlu0 %1917  ;;  %v1908_v10 = vpop.permute.xlu1 %1907 }
 0x282   : > { %v1909_v4 = vunpack.i.l.bf16 %v1908_v10  ;;  %v1919_v63 = vunpack.i.l.bf16 %v1918_v51  ;;  %v1910_v13 = vunpack.i.h.bf16 %v1908_v10  ;;  %v1920_v28 = vunpack.i.h.bf16 %v1918_v51  ;;  %v2779_v51 = vld [vmem:[%s3098_s3 + $0x2] ss:$0 sm:$0xff] }
 0x284   : > { %v917_v14 = vsel %vm196_vm0, %v2569_v38, %v1909_v4  ;;  %v898_v20 = vsel %vm196_vm0, %v2567_v11, %v1910_v13  ;;  %v1929_v38 = vunpack.i.l.bf16 %v1928_v18 }
 0x285   : > { %v924_v16 = vsel %vm498_vm1, %v917_v14, %v1914_v5  ;;  %v905_v27 = vsel %vm498_vm1, %v898_v20, %v1915_v24 }
 0x286   : > { %v931_v12 = vsel %vm506_vm2, %v924_v16, %v1919_v63  ;;  %v912_v39 = vsel %vm506_vm2, %v905_v27, %v1920_v28  ;;  %v2797_v63 = vld [vmem:[%s3097_s2 + $0x348] sm:$0xff]  ;;  %v2803_v16 = vld [vmem:[%s3097_s2 + $0x340] sm:$0xff] }
 0x287   : > { %1014 = vmatmul.f32.gmra.mxu3 %v911_v7  ;;  %1049 = vmatmul.f32.gmra.mxu0 %v931_v12  ;;  %v1085_v10 = vpop.f32.mrf.mxu1 }
 0x288   : > { %v863_v0 = vpop.permute.xlu2 %862 }
 0x289   : > { %v1933_v19 = vpop.permute.xlu0 %1932  ;;  %v1923_v25 = vpop.permute.xlu1 %1922 }
 0x28a   : > { %v1924_v26 = vunpack.i.l.bf16 %v1923_v25  ;;  %v1934_v29 = vunpack.i.l.bf16 %v1933_v19  ;;  %v1925_v30 = vunpack.i.h.bf16 %v1923_v25 }
 0x28c   : > { %v918_v35 = vsel %vm196_vm0, %v2582_v23, %v1924_v26  ;;  %v899_v41 = vsel %vm196_vm0, %v2580_v15, %v1925_v30  ;;  %v1935_v23 = vunpack.i.h.bf16 %v1933_v19 }
 0x28d   : > { %v925_v36 = vsel %vm498_vm1, %v918_v35, %v1929_v38  ;;  %v906_v48 = vsel %vm498_vm1, %v899_v41, %v1930_v42 }
 0x28e   : > { %v932_v11 = vsel %vm506_vm2, %v925_v36, %v1934_v29  ;;  %v913_v22 = vsel %vm506_vm2, %v906_v48, %v1935_v23 }
 0x28f   : > { %1017 = vmatmul.f32.gmra.mxu3 %v912_v39  ;;  %1052 = vmatmul.f32.gmra.mxu0 %v932_v11  ;;  %v1088_v62 = vpop.f32.mrf.mxu1 }
 0x291   : > { %v882_v9 = vpop.permute.xlu0 %881  ;;  %v1938_v44 = vpop.permute.xlu1 %1937 }
 0x292   : > { %v1939_v45 = vunpack.i.l.bf16 %v1938_v44  ;;  %v1940_v54 = vunpack.i.h.bf16 %v1938_v44 }
 0x294   : > { %v919_v49 = vsel %vm196_vm0, %v2604_v34, %v1939_v45  ;;  %v900_v34 = vsel %vm196_vm0, %v2602_v33, %v1940_v54 }
 0x295   : > { %v926_v52 = vsel %vm498_vm1, %v919_v49, %v1944_v46  ;;  %v907_v60 = vsel %vm498_vm1, %v900_v34, %v1945_v58 }
 0x296   : > { %v933_v55 = vsel %vm506_vm2, %v926_v52, %v882_v9 }
 0x297   : > { %1020 = vmatmul.f32.gmra.mxu3 %v913_v22  ;;  %1055 = vmatmul.f32.gmra.mxu0 %v933_v55  ;;  %v1091_v28 = vpop.f32.mrf.mxu1 }
 0x299   : > { %v1948_v15 = vpop.permute.xlu0 %1947  ;;  %v839_v17 = vpop.permute.xlu1 %838 }
 0x29a   : > { %v1950_v31 = vunpack.i.h.bf16 %v1948_v15  ;;  %v1949_v56 = vunpack.i.l.bf16 %v1948_v15  ;;  %v920_v57 = vsel %vm196_vm0, %v2623_v21, %v839_v17 }
 0x29b   : > { %v927_v59 = vsel %vm498_vm1, %v920_v57, %v861_v47 }
 0x29c   : > { %v914_v53 = vsel %vm506_vm2, %v907_v60, %v1949_v56  ;;  %v934_v61 = vsel %vm506_vm2, %v927_v59, %v1950_v31 }
 0x29f   : > { %1023 = vmatmul.f32.gmra.mxu3 %v914_v53  ;;  %1058 = vmatmul.f32.gmra.mxu0 %v934_v61  ;;  %v1094_v41 = vpop.f32.mrf.mxu1 }
 0x2a1   : > { %v841_v1 = vpop.permute.xlu1 %840  ;;  %v886_v2 = vpop.permute.xlu0 %885 }
 0x2a2   : > { %v921_v21 = vsel %vm196_vm0, %v2638_v50, %v841_v1  ;;  %v2785_v50 = vld [vmem:[%s3097_s2 + $0x358] sm:$0xff] }
 0x2a3   : > { %v928_v32 = vsel %vm498_vm1, %v921_v21, %v863_v0  ;;  %1478 = vmatpush.msra.mxu0 %v2785_v50 }
 0x2a4   : > { %v935_v33 = vsel %vm506_vm2, %v928_v32, %v886_v2 }
 0x2a5   : > { %1479 = vmatpush.msra.mxu0 %v2791_v8 }
 0x2a7   : > { %1061 = vmatmul.f32.gmra.mxu0 %v935_v33  ;;  %v1097_v57 = vpop.f32.mrf.mxu1 }
 0x2a8   : > { %1480 = vmatpush.msra.mxu0 %v2797_v63 }
 0x2aa   : > { %1481 = vmatpush.msra.mxu0 %v2803_v16 }
 0x2f2   : > { %v1006_v6 = vpop.f32.mrf.mxu3 }
 0x2f3   : > { %v1007_v3 = vadd.f32 %v2779_v51, %v1006_v6 }
 0x2f4   : > { %v1044_v4 = vpop.f32.mrf.mxu0 }
 0x2f5   : > { %v1045_v5 = vadd.f32 %v1044_v4, %v1007_v3 }
 0x2f7   : > { %v1083_v43 = vadd.f32 %v1082_v37, %v1045_v5 }
 0x2f9   : > { %v1103_v13 = vmax.f32 %v1083_v43, 0.0 }
 0x2fa   : > { %v1009_v14 = vpop.f32.mrf.mxu3  ;;  %v1100_v43 = vpop.f32.mrf.mxu1 }
 0x2fb   : > { %1110 = vst.msk [vmem:[#allocation2] sm:$0xff] %vm196_vm0, %v1103_v13  ;;  %v1010_v18 = vadd.f32 %v2779_v51, %v1009_v14 }
 0x2fc   : > { %v1047_v7 = vpop.f32.mrf.mxu0 }
 0x2fd   : > { %v1048_v12 = vadd.f32 %v1047_v7, %v1010_v18 }
 0x2ff   : > { %v1086_v19 = vadd.f32 %v1085_v10, %v1048_v12 }
 0x301   : > { %v1104_v20 = vmax.f32 %v1086_v19, 0.0 }
 0x302   : > { %v1012_v24 = vpop.f32.mrf.mxu3 }
 0x303   : > { %1111 = vst.msk [vmem:[#allocation2 + $0x8] sm:$0xff] %vm196_vm0, %v1104_v20  ;;  %v1013_v25 = vadd.f32 %v2779_v51, %v1012_v24  ;;  %v1352_v24 = vld [vmem:[%s3097_s2 + $0x2b8] sm:$0xff] }
 0x304   : > { %v1050_v26 = vpop.f32.mrf.mxu0  ;;  %1390 = vmatpush.msrb.mxu2 %v1352_v24 }
 0x305   : > { %v1051_v38 = vadd.f32 %v1050_v26, %v1013_v25  ;;  %v1351_v25 = vld [vmem:[%s3097_s2 + $0x2b0] sm:$0xff]  ;;  %v1368_v26 = vld [vmem:[%s3097_s2 + $0x338] sm:$0xff] }
 0x306   : > { %1428 = vmatpush.msra.mxu3 %v1368_v26  ;;  %1391 = vmatpush.msrb.mxu2 %v1351_v25 }
 0x307   : > { %v1089_v27 = vadd.f32 %v1088_v62, %v1051_v38  ;;  %v1367_v38 = vld [vmem:[%s3097_s2 + $0x330] sm:$0xff] }
 0x308   : > { %1429 = vmatpush.msra.mxu3 %v1367_v38 }
 0x309   : > { %v1105_v29 = vmax.f32 %v1089_v27, 0.0  ;;  %v1350_v27 = vld [vmem:[%s3097_s2 + $0x2a8] sm:$0xff] }
 0x30a   : > { %v1015_v30 = vpop.f32.mrf.mxu3  ;;  %v1131_v9 = vld [vmem:[#allocation2 + $0x2] sm:$0xff]  ;;  %1392 = vmatpush.msrb.mxu2 %v1350_v27 }
 0x30b   : > { %1112 = vst.msk [vmem:[#allocation2 + $0x10] sm:$0xff] %vm196_vm0, %v1105_v29  ;;  %v1016_v35 = vadd.f32 %v2779_v51, %v1015_v30  ;;  %v1124_v45 = vld [vmem:[#allocation2 + $0x1] sm:$0xff] }
 0x30c   : > { %v1053_v36 = vpop.f32.mrf.mxu0  ;;  %v2819_v15 = vld [vmem:[#allocation2 + $0x8] sm:$0xff]  ;;  %v1117_v27 = vld [vmem:[#allocation2] sm:$0xff] }
 0x30d   : > { %v1054_v39 = vadd.f32 %v1053_v36, %v1016_v35 }
 0x30f   : > { %v1092_v11 = vadd.f32 %v1091_v28, %v1054_v39 }
 0x311   : > { %v1106_v40 = vmax.f32 %v1092_v11, 0.0  ;;  %v1349_v11 = vld [vmem:[%s3097_s2 + $0x2a0] sm:$0xff] }
 0x312   : > { %v1018_v42 = vpop.f32.mrf.mxu3  ;;  %v2812_v44 = vld [vmem:[#allocation2 + $0x10] sm:$0xff]  ;;  %1393 = vmatpush.msrb.mxu2 %v1349_v11 }
 0x313   : > { %v1132_v46 = vld [vmem:[#allocation2 + $0xa] sm:$0xff]  ;;  %1113 = vst.msk [vmem:[#allocation2 + $0x18] sm:$0xff] %vm196_vm0, %v1106_v40  ;;  %v1019_v48 = vadd.f32 %v2779_v51, %v1018_v42  ;;  %v1956_v23 = vpack.i.bf16 %v2812_v44, %v1131_v9  ;;  %v1348_v9 = vld [vmem:[%s3097_s2 + $0x298] sm:$0xff] }
 0x314   : > { %v1951_v49 = vpack.i.bf16 %v1132_v46, %v1124_v45  ;;  %v1056_v52 = vpop.f32.mrf.mxu0  ;;  %v2831_v60 = vld [vmem:[#allocation2 + $0x9] sm:$0xff]  ;;  %1394 = vmatpush.msrb.mxu2 %v1348_v9 }
 0x315   : > { %v1057_v54 = vadd.f32 %v1056_v52, %v1019_v48  ;;  %1957 = vrot.lane.b32.xlu2 %v1956_v23, %s2116_s20  ;;  %v1366_v40 = vld [vmem:[%s3097_s2 + $0x328] sm:$0xff]  ;;  %v1347_v42 = vld [vmem:[%s3097_s2 + $0x290] sm:$0xff]  ;;  %v1364_v48 = vld [vmem:[%s3097_s2 + $0x318] sm:$0xff] }
 0x316   : > { %1952 = vrot.lane.b32.xlu1 %v1951_v49, %s2115_s14  ;;  %1430 = vmatpush.msra.mxu3 %v1366_v40 }
 0x317   : > { %v1095_v22 = vadd.f32 %v1094_v41, %v1057_v54  ;;  %v1365_v41 = vld [vmem:[%s3097_s2 + $0x320] sm:$0xff]  ;;  %1395 = vmatpush.msrb.mxu2 %v1347_v42 }
 0x318   : > { %1431 = vmatpush.msra.mxu3 %v1365_v41 }
 0x319   : > { %v1107_v55 = vmax.f32 %v1095_v22, 0.0  ;;  %v2918_v22 = vld [vmem:[#allocation2 + $0x39] sm:$0xff] }
 0x31a   : > { %v1021_v47 = vpop.f32.mrf.mxu3  ;;  %v1133_v17 = vld [vmem:[#allocation2 + $0x12] sm:$0xff]  ;;  %1432 = vmatpush.msra.mxu3 %v1364_v48 }
 0x31b   : > { %v2821_v31 = vld [vmem:[#allocation2 + $0x11] sm:$0xff]  ;;  %1114 = vst.msk [vmem:[#allocation2 + $0x20] sm:$0xff] %vm196_vm0, %v1107_v55  ;;  %v1022_v34 = vadd.f32 %v2779_v51, %v1021_v47  ;;  %1668 = vmatmul.msk.f32.vlgmr.msra.gmra.mxu0 %vm196_vm0, %v1133_v17  ;;  %v1966_v61 = vpack.i.bf16 %v1133_v17, %v2831_v60  ;;  %v1140_v55 = vld [vmem:[#allocation2 + $0x3a] sm:$0xff] }
 0x31c   : > { %v2823_v56 = vld [vmem:[#allocation2 + $0x18] sm:$0xff]  ;;  %v1961_v58 = vpack.i.bf16 %v2821_v31, %v2819_v15  ;;  %v1059_v53 = vpop.f32.mrf.mxu0 }
 0x31d   : > { %v1971_v59 = vpack.i.bf16 %v2823_v56, %v1132_v46  ;;  %v1060_v0 = vadd.f32 %v1059_v53, %v1022_v34  ;;  %v1138_v46 = vld [vmem:[#allocation2 + $0x38] sm:$0xff]  ;;  %v1141_v34 = vld [vmem:[#allocation2 + $0x40] sm:$0xff] }
 0x31e   : > { %1962 = vrot.lane.b32.xlu0 %v1961_v58, %s2117_s22  ;;  %1967 = vrot.lane.b32.xlu1 %v1966_v61, %s2115_s14  ;;  %v1346_v58 = vld [vmem:[%s3097_s2 + $0x288] sm:$0xff]  ;;  %v1345_v53 = vld [vmem:[%s3097_s2 + $0x280] sm:$0xff] }
 0x31f   : > { %1972 = vrot.lane.b32.xlu2 %v1971_v59, %s2116_s20  ;;  %v1098_v1 = vadd.f32 %v1097_v57, %v1060_v0  ;;  %v1142_v57 = vld [vmem:[#allocation2 + $0x41] sm:$0xff]  ;;  %v1363_v59 = vld [vmem:[%s3097_s2 + $0x310] sm:$0xff]  ;;  %1396 = vmatpush.msrb.mxu2 %v1346_v58  ;;  %v1344_v0 = vld [vmem:[%s3097_s2 + $0x278] sm:$0xff] }
 0x320   : > { %1433 = vmatpush.msra.mxu3 %v1363_v59  ;;  %v1362_v61 = vld [vmem:[%s3097_s2 + $0x308] sm:$0xff] }
 0x321   : > { %v1108_v2 = vmax.f32 %v1098_v1, 0.0  ;;  %1397 = vmatpush.msrb.mxu2 %v1345_v53  ;;  %v1361_v1 = vld [vmem:[%s3097_s2 + $0x300] sm:$0xff] }
 0x322   : > { %v1024_v21 = vpop.f32.mrf.mxu3  ;;  %v1134_v32 = vld [vmem:[#allocation2 + $0x1a] sm:$0xff]  ;;  %1434 = vmatpush.msra.mxu3 %v1362_v61 }
 0x323   : > { %v2837_v33 = vld [vmem:[#allocation2 + $0x19] sm:$0xff]  ;;  %1115 = vst.msk [vmem:[#allocation2 + $0x28] sm:$0xff] %vm196_vm0, %v1108_v2  ;;  %v1025_v6 = vadd.f32 %v2779_v51, %v1024_v21  ;;  %1669 = vmatmul.msk.f32.gmra.mxu0 %vm196_vm0, %v1134_v32  ;;  %v1981_v5 = vpack.i.bf16 %v1134_v32, %v2821_v31  ;;  %1398 = vmatpush.msrb.mxu2 %v1344_v0  ;;  %v1343_v2 = vld [vmem:[%s3097_s2 + $0x270] sm:$0xff] }
 0x324   : > { %v2839_v37 = vld [vmem:[#allocation2 + $0x20] sm:$0xff]  ;;  %v1976_v3 = vpack.i.bf16 %v2837_v33, %v2812_v44  ;;  %v1062_v4 = vpop.f32.mrf.mxu0  ;;  %v1360_v21 = vld [vmem:[%s3097_s2 + $0x2f8] sm:$0xff]  ;;  %1435 = vmatpush.msra.mxu3 %v1361_v1 }
 0x325   : > { %v1986_v10 = vpack.i.bf16 %v2839_v37, %v1133_v17  ;;  %v1063_v13 = vadd.f32 %v1062_v4, %v1025_v6  ;;  %1399 = vmatpush.msrb.mxu2 %v1343_v2  ;;  %v1359_v6 = vld [vmem:[%s3097_s2 + $0x2f0] sm:$0xff]  ;;  %v1340_v4 = vld [vmem:[%s3097_s2 + $0x258] sm:$0xff] }
 0x326   : > { %1977 = vrot.lane.b32.xlu0 %v1976_v3, %s2117_s22  ;;  %1982 = vrot.lane.b32.xlu1 %v1981_v5, %s2115_s14  ;;  %v1341_v3 = vld [vmem:[%s3097_s2 + $0x260] sm:$0xff] }
 0x327   : > { %1987 = vrot.lane.b32.xlu2 %v1986_v10, %s2116_s20  ;;  %v1101_v14 = vadd.f32 %v1100_v43, %v1063_v13  ;;  %1436 = vmatpush.msra.mxu3 %v1360_v21  ;;  %v1358_v10 = vld [vmem:[%s3097_s2 + $0x2e8] sm:$0xff]  ;;  %v1357_v5 = vld [vmem:[%s3097_s2 + $0x2e0] sm:$0xff]  ;;  %v1339_v43 = vld [vmem:[%s3097_s2 + $0x250] sm:$0xff] }
 0x328   : > { %v1356_v13 = vld [vmem:[%s3097_s2 + $0x2d8] sm:$0xff] }
 0x329   : > { %v1109_v51 = vmax.f32 %v1101_v14, 0.0  ;;  %1437 = vmatpush.msra.mxu3 %v1359_v6  ;;  %v1338_v14 = vld [vmem:[%s3097_s2 + $0x248] sm:$0xff] }
 0x32a   : > { %v1135_v18 = vld [vmem:[#allocation2 + $0x22] sm:$0xff] }
 0x32b   : > { %v2851_v7 = vld [vmem:[#allocation2 + $0x21] sm:$0xff]  ;;  %1116 = vst.msk [vmem:[#allocation2 + $0x30] sm:$0xff] %vm196_vm0, %v1109_v51  ;;  %1670 = vmatmul.msk.f32.gmra.mxu0 %vm196_vm0, %v1135_v18  ;;  %v1996_v20 = vpack.i.bf16 %v1135_v18, %v2837_v33  ;;  %1438 = vmatpush.msra.mxu3 %v1358_v10  ;;  %v1355_v51 = vld [vmem:[%s3097_s2 + $0x2d0] sm:$0xff] }
 0x32c   : > { %v2853_v12 = vld [vmem:[#allocation2 + $0x28] sm:$0xff]  ;;  %v1991_v62 = vpack.i.bf16 %v2851_v7, %v2823_v56 }
 0x32d   : > { %v2001_v19 = vpack.i.bf16 %v2853_v12, %v1134_v32  ;;  %v1342_v32 = vld [vmem:[%s3097_s2 + $0x268] sm:$0xff]  ;;  %1439 = vmatpush.msra.mxu3 %v1357_v5 }
 0x32e   : > { %1992 = vrot.lane.b32.xlu0 %v1991_v62, %s2117_s22  ;;  %1997 = vrot.lane.b32.xlu1 %v1996_v20, %s2115_s14  ;;  %v1337_v62 = vld [vmem:[%s3097_s2 + $0x240] sm:$0xff] }
 0x32f   : > { %2002 = vrot.lane.b32.xlu2 %v2001_v19, %s2116_s20  ;;  %1400 = vmatpush.msrb.mxu2 %v1342_v32  ;;  %v1353_v19 = vld [vmem:[%s3097_s2 + $0x2c0] sm:$0xff] }
 0x330   : > { %1440 = vmatpush.msra.mxu3 %v1356_v13 }
 0x331   : > { %1401 = vmatpush.msrb.mxu2 %v1341_v3 }
 0x332   : > { %v1136_v28 = vld [vmem:[#allocation2 + $0x2a] sm:$0xff]  ;;  %v1137_v23 = vld [vmem:[#allocation2 + $0x32] sm:$0xff]  ;;  %1441 = vmatpush.msra.mxu3 %v1355_v51 }
 0x333   : > { %v2879_v29 = vld [vmem:[#allocation2 + $0x29] sm:$0xff]  ;;  %1671 = vmatmul.msk.f32.gmra.mxu0 %vm196_vm0, %v1136_v28  ;;  %v2011_v39 = vpack.i.bf16 %v1136_v28, %v2851_v7  ;;  %v2906_v45 = vld [vmem:[#allocation2 + $0x31] sm:$0xff]  ;;  %v2031_v52 = vpack.i.bf16 %v1138_v46, %v1136_v28  ;;  %1402 = vmatpush.msrb.mxu2 %v1340_v4 }
 0x334   : > { %v2881_v30 = vld [vmem:[#allocation2 + $0x30] sm:$0xff]  ;;  %v2006_v35 = vpack.i.bf16 %v2879_v29, %v2839_v37  ;;  %v2021_v49 = vpack.i.bf16 %v2906_v45, %v2853_v12  ;;  %v2026_v54 = vpack.i.bf16 %v1137_v23, %v2879_v29  ;;  %v2041_v17 = vpack.i.bf16 %v1140_v55, %v2906_v45 }
 0x335   : > { %v2016_v36 = vpack.i.bf16 %v2881_v30, %v1135_v18  ;;  %v2036_v47 = vpack.i.bf16 %v2918_v22, %v2881_v30  ;;  %1403 = vmatpush.msrb.mxu2 %v1339_v43  ;;  %v1354_v18 = vld [vmem:[%s3097_s2 + $0x2c8] sm:$0xff] }
 0x336   : > { %2007 = vrot.lane.b32.xlu0 %v2006_v35, %s2117_s22  ;;  %2012 = vrot.lane.b32.xlu1 %v2011_v39, %s2115_s14 }
 0x337   : > { %2017 = vrot.lane.b32.xlu2 %v2016_v36, %s2116_s20  ;;  %1404 = vmatpush.msrb.mxu2 %v1338_v14 }
 0x338   : > { %1442 = vmatpush.msra.mxu3 %v1354_v18 }
 0x339   : > { %1405 = vmatpush.msrb.mxu2 %v1337_v62 }
 0x33a   : > { %1443 = vmatpush.msra.mxu3 %v1353_v19 }
 0x33b   : > { %1672 = vmatmul.msk.f32.gmra.mxu0 %vm196_vm0, %v1137_v23  ;;  %1709 = vmatpush.msra.mxu2 %v2785_v50 }
 0x33d   : > { %1710 = vmatpush.msra.mxu2 %v2791_v8 }
 0x33e   : > { %2022 = vrot.lane.b32.xlu0 %v2021_v49, %s2117_s22  ;;  %2027 = vrot.lane.b32.xlu1 %v2026_v54, %s2115_s14 }
 0x33f   : > { %2032 = vrot.lane.b32.xlu2 %v2031_v52, %s2116_s20  ;;  %1711 = vmatpush.msra.mxu2 %v2797_v63 }
 0x341   : > { %1712 = vmatpush.msra.mxu2 %v2803_v16 }
 0x343   : > { %1673 = vmatmul.msk.f32.gmra.mxu0 %vm196_vm0, %v1140_v55 }
 0x346   : > { %2037 = vrot.lane.b32.xlu0 %v2036_v47, %s2117_s22  ;;  %2042 = vrot.lane.b32.xlu1 %v2041_v17, %s2115_s14  ;;  %s2070_s14 = scalar_lea.hbm %s3099_s4, 64 }
 0x347   : > { %1191 = vrot.lane.b32.xlu2 %v1137_v23, %s2116_s20  ;;  %p2072_p1 = scmp.lt.s32.totalorder %s2070_s14, %s2066_s6 }
 0x349   : > { %p2073_p2 = por %p2072_p1, %p2071_p0 }
 0x34b   : > { %p2074_p3 = pnand %p2073_p2, %p2069_p13 }
 0x34e   : > { %1219 = vrot.lane.b32.xlu0 %v1138_v46, %s2117_s22  ;;  %1263 = vrot.lane.b32.xlu1 %v1141_v34, %s2116_s20 }
 0x34f   : > { %1286 = vrot.lane.b32.xlu2 %v1142_v57, %s2117_s22 }
 0x36f   : > { %v1958_v20 = vpop.permute.xlu2 %1957 }
 0x370   : > { %v1960_v36 = vunpack.i.h.bf16 %v1958_v20  ;;  %v1959_v39 = vunpack.i.l.bf16 %v1958_v20 }
 0x379   : > { %v1973_v24 = vpop.permute.xlu2 %1972 }
 0x37a   : > { %v1975_v49 = vunpack.i.h.bf16 %v1973_v24  ;;  %v1974_v52 = vunpack.i.l.bf16 %v1973_v24 }
 0x381   : > { %v1988_v50 = vpop.permute.xlu2 %1987 }
 0x382   : > { %v1990_v1 = vunpack.i.h.bf16 %v1988_v50  ;;  %v1989_v2 = vunpack.i.l.bf16 %v1988_v50 }
 0x388   : > { %v1953_v25 = vpop.permute.xlu1 %1952 }
 0x389   : > { %v1955_v26 = vunpack.i.h.bf16 %v1953_v25  ;;  %v1954_v38 = vunpack.i.l.bf16 %v1953_v25  ;;  %v2003_v57 = vpop.permute.xlu2 %2002 }
 0x38a   : > { %v2005_v18 = vunpack.i.h.bf16 %v2003_v57  ;;  %v2004_v62 = vunpack.i.l.bf16 %v2003_v57 }
 0x38b   : > { %v1316_v28 = vsel %vm196_vm0, %v2831_v60, %v1955_v26  ;;  %v1295_v35 = vsel %vm196_vm0, %v1117_v27, %v1954_v38 }
 0x38c   : > { %v1302_v16 = vsel %vm498_vm1, %v1295_v35, %v1959_v39  ;;  %v1323_v9 = vsel %vm498_vm1, %v1316_v28, %v1960_v36 }
 0x390   : > { %v1963_v11 = vpop.permute.xlu0 %1962  ;;  %v1968_v63 = vpop.permute.xlu1 %1967 }
 0x391   : > { %v1965_v8 = vunpack.i.h.bf16 %v1963_v11  ;;  %v1964_v40 = vunpack.i.l.bf16 %v1963_v11  ;;  %v1970_v41 = vunpack.i.h.bf16 %v1968_v63  ;;  %v1969_v42 = vunpack.i.l.bf16 %v1968_v63 }
 0x393   : > { %v1309_v46 = vsel %vm506_vm2, %v1302_v16, %v1964_v40  ;;  %v1330_v48 = vsel %vm506_vm2, %v1323_v9, %v1965_v8  ;;  %v1296_v60 = vsel %vm196_vm0, %v2819_v15, %v1969_v42  ;;  %v1317_v23 = vsel %vm196_vm0, %v2821_v31, %v1970_v41 }
 0x394   : > { %1406 = vmatmul.f32.vlgmr.msrb.gmra.mxu2 %v1309_v46  ;;  %1444 = vmatmul.f32.vlgmr.msra.gmra.mxu3 %v1330_v48  ;;  %v1303_v34 = vsel %vm498_vm1, %v1296_v60, %v1974_v52  ;;  %v1324_v58 = vsel %vm498_vm1, %v1317_v23, %v1975_v49 }
 0x398   : > { %v1978_v54 = vpop.permute.xlu0 %1977  ;;  %v1983_v17 = vpop.permute.xlu1 %1982 }
 0x399   : > { %v1980_v55 = vunpack.i.h.bf16 %v1978_v54  ;;  %v1979_v47 = vunpack.i.l.bf16 %v1978_v54  ;;  %v1985_v59 = vunpack.i.h.bf16 %v1983_v17  ;;  %v1984_v53 = vunpack.i.l.bf16 %v1983_v17 }
 0x39b   : > { %v1310_v61 = vsel %vm506_vm2, %v1303_v34, %v1979_v47  ;;  %v1331_v15 = vsel %vm506_vm2, %v1324_v58, %v1980_v55  ;;  %v1297_v31 = vsel %vm196_vm0, %v2812_v44, %v1984_v53  ;;  %v1318_v0 = vsel %vm196_vm0, %v2837_v33, %v1985_v59  ;;  %v2018_v44 = vpop.permute.xlu2 %2017 }
 0x39c   : > { %1409 = vmatmul.f32.gmra.mxu2 %v1310_v61  ;;  %1447 = vmatmul.f32.gmra.mxu3 %v1331_v15  ;;  %v1304_v10 = vsel %vm498_vm1, %v1297_v31, %v1989_v2  ;;  %v1325_v4 = vsel %vm498_vm1, %v1318_v0, %v1990_v1  ;;  %v2020_v50 = vunpack.i.h.bf16 %v2018_v44  ;;  %v2019_v11 = vunpack.i.l.bf16 %v2018_v44 }
 0x3a0   : > { %v1993_v21 = vpop.permute.xlu0 %1992  ;;  %v1998_v3 = vpop.permute.xlu1 %1997 }
 0x3a1   : > { %v1995_v32 = vunpack.i.h.bf16 %v1993_v21  ;;  %v1994_v6 = vunpack.i.l.bf16 %v1993_v21  ;;  %v2000_v5 = vunpack.i.h.bf16 %v1998_v3  ;;  %v1999_v43 = vunpack.i.l.bf16 %v1998_v3  ;;  %v2049_v3 = vld [vmem:[%s3098_s3 + $0x3] ss:$0 sm:$0xff] }
 0x3a3   : > { %v1311_v13 = vsel %vm506_vm2, %v1304_v10, %v1994_v6  ;;  %v1332_v14 = vsel %vm506_vm2, %v1325_v4, %v1995_v32  ;;  %v1298_v33 = vsel %vm196_vm0, %v2823_v56, %v1999_v43  ;;  %v1319_v51 = vsel %vm196_vm0, %v2851_v7, %v2000_v5  ;;  %v2033_v56 = vpop.permute.xlu2 %2032  ;;  %v1143_v6 = vld [vmem:[#allocation2 + $0x42] sm:$0xff] }
 0x3a4   : > { %1412 = vmatmul.f32.gmra.mxu2 %v1311_v13  ;;  %1450 = vmatmul.f32.gmra.mxu3 %v1332_v14  ;;  %v1305_v26 = vsel %vm498_vm1, %v1298_v33, %v2004_v62  ;;  %v1326_v38 = vsel %vm498_vm1, %v1319_v51, %v2005_v18  ;;  %v2035_v23 = vunpack.i.h.bf16 %v2033_v56  ;;  %v2034_v49 = vunpack.i.l.bf16 %v2033_v56 }
 0x3a8   : > { %v2008_v19 = vpop.permute.xlu0 %2007  ;;  %v2013_v25 = vpop.permute.xlu1 %2012 }
 0x3a9   : > { %v2010_v20 = vunpack.i.h.bf16 %v2008_v19  ;;  %v2009_v24 = vunpack.i.l.bf16 %v2008_v19  ;;  %v2015_v27 = vunpack.i.h.bf16 %v2013_v25  ;;  %v2014_v28 = vunpack.i.l.bf16 %v2013_v25 }
 0x3ab   : > { %v1312_v35 = vsel %vm506_vm2, %v1305_v26, %v2009_v24  ;;  %v1333_v36 = vsel %vm506_vm2, %v1326_v38, %v2010_v20  ;;  %v1299_v7 = vsel %vm196_vm0, %v2839_v37, %v2014_v28  ;;  %v1320_v39 = vsel %vm196_vm0, %v2879_v29, %v2015_v27  ;;  %v1192_v52 = vpop.permute.xlu2 %1191 }
 0x3ac   : > { %1415 = vmatmul.f32.gmra.mxu2 %v1312_v35  ;;  %1453 = vmatmul.f32.gmra.mxu3 %v1333_v36  ;;  %v1306_v9 = vsel %vm498_vm1, %v1299_v7, %v2019_v11  ;;  %v1327_v41 = vsel %vm498_vm1, %v1320_v39, %v2020_v50 }
 0x3b0   : > { %v2023_v8 = vpop.permute.xlu0 %2022  ;;  %v2028_v16 = vpop.permute.xlu1 %2027 }
 0x3b1   : > { %v2025_v40 = vunpack.i.h.bf16 %v2023_v8  ;;  %v2024_v63 = vunpack.i.l.bf16 %v2023_v8  ;;  %v2030_v42 = vunpack.i.h.bf16 %v2028_v16  ;;  %v2029_v46 = vunpack.i.l.bf16 %v2028_v16 }
 0x3b3   : > { %v1313_v48 = vsel %vm506_vm2, %v1306_v9, %v2024_v63  ;;  %v1334_v60 = vsel %vm506_vm2, %v1327_v41, %v2025_v40  ;;  %v1300_v37 = vsel %vm196_vm0, %v2853_v12, %v2029_v46  ;;  %v1321_v29 = vsel %vm196_vm0, %v2906_v45, %v2030_v42  ;;  %v1287_v15 = vpop.permute.xlu2 %1286 }
 0x3b4   : > { %1418 = vmatmul.f32.gmra.mxu2 %v1313_v48  ;;  %1456 = vmatmul.f32.gmra.mxu3 %v1334_v60  ;;  %v1307_v57 = vsel %vm498_vm1, %v1300_v37, %v2034_v49  ;;  %v1328_v34 = vsel %vm498_vm1, %v1321_v29, %v2035_v23 }
 0x3b8   : > { %v2038_v54 = vpop.permute.xlu0 %2037  ;;  %v2043_v17 = vpop.permute.xlu1 %2042 }
 0x3b9   : > { %v2040_v55 = vunpack.i.h.bf16 %v2038_v54  ;;  %v2039_v47 = vunpack.i.l.bf16 %v2038_v54  ;;  %v2044_v58 = vunpack.i.l.bf16 %v2043_v17  ;;  %v2045_v12 = vunpack.i.h.bf16 %v2043_v17 }
 0x3bb   : > { %v1314_v59 = vsel %vm506_vm2, %v1307_v57, %v2039_v47  ;;  %v1335_v53 = vsel %vm506_vm2, %v1328_v34, %v2040_v55  ;;  %v1301_v45 = vsel %vm196_vm0, %v2881_v30, %v2044_v58  ;;  %v1322_v0 = vsel %vm196_vm0, %v2918_v22, %v2045_v12  ;;  %v1483_v30 = vpop.f32.mrf.mxu0 }
 0x3bc   : > { %1421 = vmatmul.f32.gmra.mxu2 %v1314_v59  ;;  %1459 = vmatmul.f32.gmra.mxu3 %v1335_v53  ;;  %v1308_v2 = vsel %vm498_vm1, %v1301_v45, %v1192_v52 }
 0x3c0   : > { %v1220_v61 = vpop.permute.xlu0 %1219  ;;  %v1264_v31 = vpop.permute.xlu1 %1263 }
 0x3c1   : > { %v1329_v1 = vsel %vm498_vm1, %v1322_v0, %v1264_v31  ;;  %v1315_v21 = vsel %vm506_vm2, %v1308_v2, %v1220_v61  ;;  %v1525_v31 = vld [vmem:[#allocation3 + $0x38] sm:$0xff]  ;;  %v1526_v0 = vld [vmem:[#allocation3 + $0x40] sm:$0xff]  ;;  %v1528_v2 = vld [vmem:[#allocation3 + $0x50] sm:$0xff] }
 0x3c2   : > { %v1336_v32 = vsel %vm506_vm2, %v1329_v1, %v1287_v15  ;;  %v1527_v1 = vld [vmem:[#allocation3 + $0x48] sm:$0xff] }
 0x3c3   : > { %v1486_v5 = vpop.f32.mrf.mxu0 }
 0x3c4   : > { %1424 = vmatmul.f32.gmra.mxu2 %v1315_v21  ;;  %1462 = vmatmul.f32.gmra.mxu3 %v1336_v32  ;;  %v1529_v21 = vld [vmem:[#allocation3 + $0x58] sm:$0xff]  ;;  %v1530_v32 = vld [vmem:[#allocation3 + $0x60] sm:$0xff] }
 0x3cb   : > { %v1489_v62 = vpop.f32.mrf.mxu0 }
 0x3cc   : > { %1674 = vmatmul.msk.f32.vlgmr.msra.gmra.mxu2 %vm196_vm0, %v1143_v6  ;;  %v1531_v6 = vld [vmem:[#allocation3 + $0x68] sm:$0xff] }
 0x3d3   : > { %v1492_v35 = vpop.f32.mrf.mxu0 }
 0x3db   : > { %v1495_v42 = vpop.f32.mrf.mxu0 }
 0x3e3   : > { %v1498_v52 = vpop.f32.mrf.mxu0 }
 0x417   : > { %v1407_v10 = vpop.f32.mrf.mxu2  ;;  %v1445_v22 = vpop.f32.mrf.mxu3 }
 0x418   : > { %v1408_v4 = vadd.f32 %v2049_v3, %v1407_v10 }
 0x41a   : > { %v1446_v43 = vadd.f32 %v1445_v22, %v1408_v4 }
 0x41c   : > { %v1484_v13 = vadd.f32 %v1483_v30, %v1446_v43  ;;  %v1532_v30 = vld [vmem:[#allocation3 + $0x70] sm:$0xff] }
 0x41e   : > { %v1504_v14 = vmax.f32 %v1484_v13, 0.0 }
 0x41f   : > { %v1410_v44 = vpop.f32.mrf.mxu2  ;;  %v1448_v33 = vpop.f32.mrf.mxu3 }
 0x420   : > { %1511 = vst.msk [vmem:[#allocation3] sm:$0xff] %vm196_vm0, %v1504_v14  ;;  %v1411_v51 = vadd.f32 %v2049_v3, %v1410_v44 }
 0x422   : > { %v1449_v18 = vadd.f32 %v1448_v33, %v1411_v51 }
 0x424   : > { %v1487_v19 = vadd.f32 %v1486_v5, %v1449_v18 }
 0x426   : > { %v1505_v20 = vmax.f32 %v1487_v19, 0.0 }
 0x427   : > { %v1413_v24 = vpop.f32.mrf.mxu2  ;;  %v1451_v25 = vpop.f32.mrf.mxu3  ;;  %v1518_v26 = vld [vmem:[#allocation3] sm:$0xff] }
 0x428   : > { %1512 = vst.msk [vmem:[#allocation3 + $0x8] sm:$0xff] %vm196_vm0, %v1505_v20  ;;  %v1414_v38 = vadd.f32 %v2049_v3, %v1413_v24  ;;  %1534 = vxpose.xlu0.b32.start [1/16] (narrow) %v1518_v26, 32 }
 0x42a   : > { %v1452_v27 = vadd.f32 %v1451_v25, %v1414_v38 }
 0x42c   : > { %v1490_v28 = vadd.f32 %v1489_v62, %v1452_v27 }
 0x42e   : > { %v1506_v36 = vmax.f32 %v1490_v28, 0.0 }
 0x42f   : > { %v1416_v56 = vpop.f32.mrf.mxu2  ;;  %v1454_v7 = vpop.f32.mrf.mxu3  ;;  %v1519_v39 = vld [vmem:[#allocation3 + $0x8] sm:$0xff] }
 0x430   : > { %1513 = vst.msk [vmem:[#allocation3 + $0x10] sm:$0xff] %vm196_vm0, %v1506_v36  ;;  %v1417_v50 = vadd.f32 %v2049_v3, %v1416_v56  ;;  %1535 = vxpose.xlu0.b32.cont [2/16] (narrow) %v1519_v39, 32 }
 0x432   : > { %v1455_v11 = vadd.f32 %v1454_v7, %v1417_v50 }
 0x434   : > { %v1493_v8 = vadd.f32 %v1492_v35, %v1455_v11 }
 0x436   : > { %v1507_v40 = vmax.f32 %v1493_v8, 0.0 }
 0x437   : > { %v1419_v63 = vpop.f32.mrf.mxu2  ;;  %v1457_v16 = vpop.f32.mrf.mxu3  ;;  %v1520_v9 = vld [vmem:[#allocation3 + $0x10] sm:$0xff] }
 0x438   : > { %1514 = vst.msk [vmem:[#allocation3 + $0x18] sm:$0xff] %vm196_vm0, %v1507_v40  ;;  %v1420_v41 = vadd.f32 %v2049_v3, %v1419_v63  ;;  %1536 = vxpose.xlu0.b32.cont [3/16] (narrow) %v1520_v9, 32 }
 0x43a   : > { %v1458_v46 = vadd.f32 %v1457_v16, %v1420_v41 }
 0x43c   : > { %v1496_v48 = vadd.f32 %v1495_v42, %v1458_v46 }
 0x43e   : > { %v1508_v60 = vmax.f32 %v1496_v48, 0.0 }
 0x43f   : > { %v1422_v37 = vpop.f32.mrf.mxu2  ;;  %v1521_v29 = vld [vmem:[#allocation3 + $0x18] sm:$0xff]  ;;  %v1460_v49 = vpop.f32.mrf.mxu3 }
 0x440   : > { %1515 = vst.msk [vmem:[#allocation3 + $0x20] sm:$0xff] %vm196_vm0, %v1508_v60  ;;  %v1423_v23 = vadd.f32 %v2049_v3, %v1422_v37  ;;  %1537 = vxpose.xlu0.b32.cont [4/16] (narrow) %v1521_v29, 32 }
 0x442   : > { %v1461_v54 = vadd.f32 %v1460_v49, %v1423_v23 }
 0x444   : > { %v1499_v55 = vadd.f32 %v1498_v52, %v1461_v54 }
 0x446   : > { %v1509_v47 = vmax.f32 %v1499_v55, 0.0 }
 0x447   : > { %v1425_v17 = vpop.f32.mrf.mxu2  ;;  %v1522_v57 = vld [vmem:[#allocation3 + $0x20] sm:$0xff]  ;;  %v1463_v58 = vpop.f32.mrf.mxu3 }
 0x448   : > { %1516 = vst.msk [vmem:[#allocation3 + $0x28] sm:$0xff] %vm196_vm0, %v1509_v47  ;;  %1538 = vxpose.xlu0.b32.cont [5/16] (narrow) %v1522_v57, 32  ;;  %v1426_v34 = vadd.f32 %v2049_v3, %v1425_v17  ;;  %v1533_v3 = vld [vmem:[#allocation3 + $0x78] sm:$0xff] }
 0x44a   : > { %v1464_v59 = vadd.f32 %v1463_v58, %v1426_v34 }
 0x44f   : > { %v1501_v53 = vpop.f32.mrf.mxu2  ;;  %v1523_v12 = vld [vmem:[#allocation3 + $0x28] sm:$0xff] }
 0x450   : > { %v1502_v45 = vadd.f32 %v1501_v53, %v1464_v59  ;;  %1539 = vxpose.xlu0.b32.cont [6/16] (narrow) %v1523_v12, 32 }
 0x452   : > { %v1510_v61 = vmax.f32 %v1502_v45, 0.0 }
 0x454   : > { %1517 = vst.msk [vmem:[#allocation3 + $0x30] sm:$0xff] %vm196_vm0, %v1510_v61 }
 0x45b   : > { %v1524_v15 = vld [vmem:[#allocation3 + $0x30] sm:$0xff] }
 0x45c   : > { %1540 = vxpose.xlu0.b32.cont [7/16] (narrow) %v1524_v15, 32 }
 0x464   : > { %1541 = vxpose.xlu0.b32.cont [8/16] (narrow) %v1525_v31, 32 }
 0x46c   : > { %1542 = vxpose.xlu0.b32.cont [9/16] (narrow) %v1526_v0, 32 }
 0x474   : > { %1543 = vxpose.xlu0.b32.cont [10/16] (narrow) %v1527_v1, 32 }
 0x47c   : > { %1544 = vxpose.xlu0.b32.cont [11/16] (narrow) %v1528_v2, 32 }
 0x484   : > { %1545 = vxpose.xlu0.b32.cont [12/16] (narrow) %v1529_v21, 32 }
 0x48c   : > { %1546 = vxpose.xlu0.b32.cont [13/16] (narrow) %v1530_v32, 32 }
 0x494   : > { %1547 = vxpose.xlu0.b32.cont [14/16] (narrow) %v1531_v6, 32 }
 0x49c   : > { %1548 = vxpose.xlu0.b32.cont [15/16] (narrow) %v1532_v30, 32 }
 0x4a4   : > { %1549 = vxpose.xlu0.b32.end [16/16] (narrow) %v1533_v3, 32 }
 0x4d0   : > { %v1550_v10 = vpop.trf.xlu0 }
 0x4d1   : > { %1566 = vst [vmem:[%s190_s11] sm:$0xff] %v1550_v10 }
 0x4d8   : > { %v1551_v22 = vpop.trf.xlu0 }
 0x4d9   : > { %1567 = vst [vmem:[%s190_s11 + $0x8] sm:$0xff] %v1551_v22 }
 0x4e0   : > { %v1552_v4 = vpop.trf.xlu0 }
 0x4e1   : > { %1568 = vst [vmem:[%s190_s11 + $0x10] sm:$0xff] %v1552_v4 }
 0x4e8   : > { %v1553_v5 = vpop.trf.xlu0 }
 0x4e9   : > { %1569 = vst [vmem:[%s190_s11 + $0x18] sm:$0xff] %v1553_v5 }
 0x4ea   : > { %2077 = shalt.err (!%p2074_p3)
}
 0x4eb   : > { %s2118_s20 = smov 128   ;;  %s2119_s9 = smov 8  }
 0x4ec   : > { %1716 = dma.vmem_to_hbm [thread:$0]  (%p2183_p5), %s1584_s28, 512, %s1586_s29, %s1571_s30, %s2118_s20, %s2118_s20, %s2119_s9  }
 0x4ed PF: > { %p1722_p4 = scmp.ge.s32.totalorder %s2112_s18, 2  ;;  %s1600_s10 = sand.u32 1, %s2100_s15  }
 0x4ee   : > { %s1601_s11 = scalar_lea.sflag [#allocation5], %s1600_s10 }
 0x4ef   : > { %p1719_p7 = pnand %p1722_p4, %p2187_p6 }
 0x4f1   : > { %p1720_p8 = pneg %p1719_p7 }
 0x4f3   : > { %2095 = dma.done.wait (%p1720_p8), %s1601_s11, 512  }
 0x4f4   : > { %2097 = vsyncadd (%p1720_p8), %s1601_s11, 4294966784  ;;  %p14_p9 = scmp.ge.s32.totalorder %s2170_s21, 4   ;;  %s3102_s15 = smov %s2104_s16 }
 0x4f5   : > { %s3103_s16 = smov %s2108_s17  ;;  %s3104_s17 = smov %s2181_s24 }
 0x4f6   : > { %s3105_s18 = smov %s2170_s21  ;;  %16 = sbr.rel (!%p14_p9) target bundleno = 3 (0x3), region = 71 }
 0x4fb   :  { %1607 = vsyncpa [#allocation5], 1 }
 0x4fc   :  { %1609 = vsyncpa [#allocation5 + $0x1], 1 }

</bundles_post_ra>
